<compile_context>
chip_gen: v5e
topology: v5e:2x2
jax: 0.10.0
libtpu: 0.0.40
codegen_flags: <defaults>
</compile_context>

<pallas_src>
import math
from functools import partial

import jax
import jax.numpy as jnp
from jax.experimental import pallas as pl
from jax.experimental.pallas import tpu as pltpu

VMEM = pltpu.MemorySpace.VMEM
LANE = 128


# ----------------------------- Pallas kernels ------------------------------

def _conv_pool_kernel(w_ref, p_ref, s_ref, o_ref, *, np_pad):
    """conv-as-matmul (MXU) + ReLU + SFG gate + fused 2x2 max-pool.

    w_ref: (C_out, KH*KW*C_in)      effective RKR weight, cols ordered (kh, kw, c_in)
    p_ref: (KH*KW*C_in, 4*np_pad)   im2col patches, cols ordered (pool-quad, b, ph, pw);
                                    each quad segment lane-padded to np_pad (mult of 128)
    s_ref: (C_out, 1)               SFG per-channel gate
    o_ref: (C_out, np_pad)          pooled output (lane-dense, unmasked store)
    """
    y = jnp.dot(w_ref[...], p_ref[...], preferred_element_type=jnp.float32)
    y = jnp.maximum(y, 0.0) * s_ref[...]            # ReLU then SFG scale (order matters)
    o_ref[...] = jnp.maximum(
        jnp.maximum(y[:, 0 * np_pad:1 * np_pad], y[:, 1 * np_pad:2 * np_pad]),
        jnp.maximum(y[:, 2 * np_pad:3 * np_pad], y[:, 3 * np_pad:4 * np_pad]))


def _fc_stack_kernel(x_ref, w1_ref, s1_ref, w2_ref, s2_ref, w3_ref, b3_ref, o_ref):
    # fc1 -> ReLU -> SFG -> fc2 -> ReLU -> SFG -> task head (+ bias), all fused.
    h1 = jnp.dot(x_ref[...], w1_ref[...], preferred_element_type=jnp.float32)
    h1 = jnp.maximum(h1, 0.0) * s1_ref[...]
    h2 = jnp.dot(h1, w2_ref[...], preferred_element_type=jnp.float32)
    h2 = jnp.maximum(h2, 0.0) * s2_ref[...]
    o_ref[...] = (jnp.dot(h2, w3_ref[...], preferred_element_type=jnp.float32)
                  + b3_ref[...])


# ----------------------------- Pallas wrappers ------------------------------

def conv_relu_scale_pool(w_mat, patches, scale, np_valid, np_pad):
    """w_mat: (C_out, K), patches: (K, 4*np_pad), scale: (C_out, 1).

    Returns pooled activation (C_out, np_valid) with columns ordered (b, ph, pw).
    Whole batch in ONE grid step (grid collapsed); all operands tiny vs VMEM.
    """
    C_out, K = w_mat.shape
    flops = 2 * C_out * K * (4 * np_pad)
    bytes_accessed = 4 * (w_mat.size + patches.size + scale.size + C_out * np_pad)
    out = pl.pallas_call(
        partial(_conv_pool_kernel, np_pad=np_pad),
        out_shape=jax.ShapeDtypeStruct((C_out, np_pad), jnp.float32),
        in_specs=[pl.BlockSpec(memory_space=VMEM)] * 3,
        out_specs=pl.BlockSpec(memory_space=VMEM),
        cost_estimate=pl.CostEstimate(flops=flops, transcendentals=0,
                                      bytes_accessed=bytes_accessed),
    )(w_mat, patches, scale)
    return out[:, :np_valid]


def fc_stack(x, w1, s1, w2, s2, w3, b3, tile_m=128):
    """Fused fc1+SFG -> fc2+SFG -> task head.

    B <= tile_m: single whole-array block.  B > tile_m: grid over M tiles of
    tile_m rows (weights get constant index_maps so they stay VMEM resident).
    tile_m=128 matches the v5e MXU M dimension and is fine on v6e/v7x.
    """
    B, D = x.shape
    N = w3.shape[1]
    if B > tile_m:
        Bp = pl.cdiv(B, tile_m) * tile_m
        xp = jnp.pad(x, ((0, Bp - B), (0, 0))) if Bp != B else x
        tm = tile_m
    else:
        Bp, xp, tm = B, x, B

    flops = 2 * Bp * (w1.size + w2.size + w3.size)
    bytes_accessed = 4 * (xp.size + w1.size + s1.size + w2.size + s2.size
                          + w3.size + b3.size + Bp * N)

    def const_spec(shape):
        return pl.BlockSpec(shape, lambda i: (0, 0))

    out = pl.pallas_call(
        _fc_stack_kernel,
        out_shape=jax.ShapeDtypeStruct((Bp, N), jnp.float32),
        grid=(Bp // tm,),
        in_specs=[
            pl.BlockSpec((tm, D), lambda i: (i, 0)),
            const_spec(w1.shape), const_spec(s1.shape),
            const_spec(w2.shape), const_spec(s2.shape),
            const_spec(w3.shape), const_spec(b3.shape),
        ],
        out_specs=pl.BlockSpec((tm, N), lambda i: (i, 0)),
        compiler_params=pltpu.CompilerParams(dimension_semantics=("parallel",)),
        cost_estimate=pl.CostEstimate(flops=flops, transcendentals=0,
                                      bytes_accessed=bytes_accessed),
    )(xp, w1, s1, w2, s2, w3, b3)
    return out if Bp == B else out[:B]


# ------------------------------- JAX glue -----------------------------------

def _pool_patches(x_nchw, KH, KW):
    """im2col patch matrix for a valid, stride-1 conv followed by 2x2 max-pool.

    Rows ordered (kh, kw, c_in).  Columns ordered (pool-quad, b, ph, pw), each
    quad segment lane-padded to a multiple of 128, so the kernel's fused pool is
    a max of four lane-aligned slices and its store is lane-dense.
    """
    B, C, H, W = x_nchw.shape
    OH, OW = H - KH + 1, W - KW + 1
    PH, PW = OH // 2, OW // 2
    NP = B * PH * PW
    NPp = pl.cdiv(NP, LANE) * LANE
    wins = [x_nchw[:, :, ki:ki + OH, kj:kj + OW]
            for ki in range(KH) for kj in range(KW)]
    pat = jnp.stack(wins, axis=0)                       # (T, B, C, OH, OW)
    pat = pat.reshape(KH * KW, B, C, PH, 2, PW, 2)      # oh -> (ph, dh), ow -> (pw, dw)
    pat = jnp.transpose(pat, (0, 2, 4, 6, 1, 3, 5))     # (T, C, dh, dw, B, PH, PW)
    pat = pat.reshape(KH * KW * C, 4, NP)
    pat = jnp.pad(pat, ((0, 0), (0, 0), (0, NPp - NP)))
    return pat.reshape(KH * KW * C, 4 * NPp), PH, PW, NP, NPp


def _conv_task_weights(p, task):
    """Effective RKR conv weight as (C_out, KH*KW*C_in), cols ordered (kh, kw, c_in)."""
    w = p["weight"]                                   # (c_out, c_in, kh, kw)
    c_out, c_in, kh, kw = w.shape
    # RKR: R = (LM @ RM).view(kh, kw, c_in, c_out).permute(3, 2, 0, 1)
    R = (p["LM"][task] @ p["RM"][task]).reshape(kh, kw, c_in, c_out)
    R = jnp.transpose(R, (3, 2, 0, 1))
    w_eff = w + R                                     # (c_out, c_in, kh, kw)
    w_mat = jnp.transpose(w_eff, (0, 2, 3, 1)).reshape(c_out, kh * kw * c_in)
    scale = p["sfg"][task].reshape(c_out, 1)
    return w_mat, scale, kh, kw


def _fc_task_weights(p, task):
    w = p["weight"]                                   # (h_out, h_in)
    R = (p["LM"][task] @ p["RM"][task]).T             # permute(1, 0)
    w_eff = (w + R).T                                 # (h_in, h_out)
    s = p["sfg"][task].reshape(1, -1)
    return w_eff, s


@partial(jax.jit, static_argnames=("task",))
def lenet_forward(x_nchw, params, task):
    B = x_nchw.shape[0]

    # conv1 + ReLU + SFG + 2x2 maxpool (one fused MXU kernel)
    w1m, s1m, kh1, kw1 = _conv_task_weights(params["conv1"], task)
    pat1, PH1, PW1, np1, np1p = _pool_patches(x_nchw, kh1, kw1)
    a1 = conv_relu_scale_pool(w1m, pat1, s1m, np1, np1p)        # (6, B*14*14)
    c1 = w1m.shape[0]
    a1 = a1.reshape(c1, B, PH1, PW1).transpose(1, 0, 2, 3)      # NCHW (B, 6, 14, 14)

    # conv2 + ReLU + SFG + 2x2 maxpool
    w2m, s2m, kh2, kw2 = _conv_task_weights(params["conv2"], task)
    pat2, PH2, PW2, np2, np2p = _pool_patches(a1, kh2, kw2)
    a2 = conv_relu_scale_pool(w2m, pat2, s2m, np2, np2p)        # (16, B*5*5)
    c2 = w2m.shape[0]

    # PyTorch .view(B, -1) on the NCHW tensor: flat index = c*PH*PW + h*PW + w
    feat = a2.reshape(c2, B, PH2 * PW2).transpose(1, 0, 2).reshape(B, c2 * PH2 * PW2)

    wf1, sf1 = _fc_task_weights(params["fc1"], task)            # (400, 120)
    wf2, sf2 = _fc_task_weights(params["fc2"], task)            # (120, 84)
    wh = params["fc_list_w"][task].T                            # (84, 10)
    bh = params["fc_list_b"][task].reshape(1, -1)               # (1, 10)

    return fc_stack(feat, wf1, sf1, wf2, sf2, wh, bh)           # (B, 10)


# --------------------------- parameter creation ------------------------------

def kaiming_uniform(key, shape):
    fan_in = math.prod(shape[1:]) if len(shape) > 1 else shape[0]
    bound = math.sqrt(6.0 / fan_in)
    return jax.random.uniform(key, shape, jnp.float32, -bound, bound)


def make_params(key, K=2, task_num=2):
    scale = 0.1
    keys = iter(jax.random.split(key, 64))

    def conv_params(c_in, c_out, k):
        return {
            "weight": kaiming_uniform(next(keys), (c_out, c_in, k, k)),
            "LM": jnp.stack([kaiming_uniform(next(keys), (k * c_in, K)) * scale
                             for _ in range(task_num)]),
            "RM": jnp.stack([kaiming_uniform(next(keys), (K, k * c_out)) * scale
                             for _ in range(task_num)]),
            "sfg": jnp.ones((task_num, c_out), jnp.float32),   # SFG_Conv init = ones
        }

    def fc_params(h_in, h_out):
        return {
            "weight": kaiming_uniform(next(keys), (h_out, h_in)),
            "LM": jnp.stack([kaiming_uniform(next(keys), (h_in, K)) * scale
                             for _ in range(task_num)]),
            "RM": jnp.stack([kaiming_uniform(next(keys), (K, h_out)) * scale
                             for _ in range(task_num)]),
            "sfg": jnp.ones((task_num, h_out), jnp.float32),   # SFG_FC init = ones
        }

    # per-task heads nn.Linear(84, 10): default uniform(-1/sqrt(fan_in), ...)
    bnd = 1.0 / math.sqrt(84.0)
    fc_list_w = jnp.stack([jax.random.uniform(next(keys), (10, 84), jnp.float32, -bnd, bnd)
                           for _ in range(task_num)])
    fc_list_b = jnp.stack([jax.random.uniform(next(keys), (10,), jnp.float32, -bnd, bnd)
                           for _ in range(task_num)])

    return {
        "conv1": conv_params(3, 6, 5),
        "conv2": conv_params(6, 16, 5),
        "fc1": fc_params(16 * 5 * 5, 120),
        "fc2": fc_params(120, 84),
        "fc_list_w": fc_list_w,
        "fc_list_b": fc_list_b,
    }


# --------------------------------- main --------------------------------------

if __name__ == "__main__":
    root = jax.random.PRNGKey(0)
    k_params, k_x = jax.random.split(root)
    params = make_params(k_params, K=2, task_num=2)

    # LeNet geometry (16*5*5 flatten) implies 32x32 inputs with 3 channels.
    x = jax.random.normal(k_x, (2, 3, 32, 32), jnp.float32)

    out = lenet_forward(x, params, task=0)
    out = jax.block_until_ready(out)
    assert out.shape == (2, 10) and out.dtype == jnp.float32
    print("KERNEL_OK")
</pallas_src>

<mosaic_0001>
module attributes {stable_mosaic.version = 11 : i64} {
  func.func @_conv_pool_kernel(%arg0: memref<6x75xf32, #tpu.memory_space<vmem>>, %arg1: memref<75x2048xf32, #tpu.memory_space<vmem>>, %arg2: memref<6x1xf32, #tpu.memory_space<vmem>>, %arg3: memref<6x512xf32, #tpu.memory_space<vmem>>) attributes {dimension_semantics = [], scalar_prefetch = 0 : i64, scratch_operands = 0 : i64, tpu.core_type = #tpu.core_type<tc>} {
    %c0 = arith.constant 0 : index
    %c0_0 = arith.constant 0 : index
    %0 = vector.load %arg0[%c0, %c0_0] : memref<6x75xf32, #tpu.memory_space<vmem>>, vector<6x75xf32>
    %c0_1 = arith.constant 0 : index
    %c0_2 = arith.constant 0 : index
    %1 = vector.load %arg1[%c0_1, %c0_2] : memref<75x2048xf32, #tpu.memory_space<vmem>>, vector<75x2048xf32>
    %cst = arith.constant dense<0.000000e+00> : vector<6x2048xf32>
    %2 = tpu.matmul %0, %1, %cst {dimension_numbers = #tpu.dot_dimension_numbers<[1], [0], [0], [1], [0, 0, 1, 1], [], []>} : vector<6x75xf32>, vector<75x2048xf32>, vector<6x2048xf32> -> vector<6x2048xf32>
    %cst_3 = arith.constant 0.000000e+00 : f32
    %3 = vector.broadcast %cst_3 : f32 to vector<6x2048xf32>
    %4 = arith.maximumf %2, %3 : vector<6x2048xf32>
    %c0_4 = arith.constant 0 : index
    %c0_5 = arith.constant 0 : index
    %5 = vector.load %arg2[%c0_4, %c0_5] : memref<6x1xf32, #tpu.memory_space<vmem>>, vector<6x1xf32>
    %6 = vector.broadcast %5 : vector<6x1xf32> to vector<6x2048xf32>
    %7 = arith.mulf %4, %6 : vector<6x2048xf32>
    %8 = vector.extract_strided_slice %7 {offsets = [0, 0], sizes = [6, 512], strides = [1, 1]} : vector<6x2048xf32> to vector<6x512xf32>
    %9 = vector.extract_strided_slice %7 {offsets = [0, 512], sizes = [6, 512], strides = [1, 1]} : vector<6x2048xf32> to vector<6x512xf32>
    %10 = arith.maximumf %8, %9 : vector<6x512xf32>
    %11 = vector.extract_strided_slice %7 {offsets = [0, 1024], sizes = [6, 512], strides = [1, 1]} : vector<6x2048xf32> to vector<6x512xf32>
    %12 = vector.extract_strided_slice %7 {offsets = [0, 1536], sizes = [6, 512], strides = [1, 1]} : vector<6x2048xf32> to vector<6x512xf32>
    %13 = arith.maximumf %11, %12 : vector<6x512xf32>
    %14 = arith.maximumf %10, %13 : vector<6x512xf32>
    %c0_6 = arith.constant 0 : index
    %c0_7 = arith.constant 0 : index
    %15 = vector.load %arg3[%c0_6, %c0_7] : memref<6x512xf32, #tpu.memory_space<vmem>>, vector<6x512xf32>
    tpu.vector_store %arg3[%c0_6, %c0_7], %14 {strides = array<i32>} : memref<6x512xf32, #tpu.memory_space<vmem>>, vector<6x512xf32>,
    return
  }
}

module attributes {stable_mosaic.version = 11 : i64} {
  func.func @_conv_pool_kernel(%arg0: memref<16x150xf32, #tpu.memory_space<vmem>>, %arg1: memref<150x512xf32, #tpu.memory_space<vmem>>, %arg2: memref<16x1xf32, #tpu.memory_space<vmem>>, %arg3: memref<16x128xf32, #tpu.memory_space<vmem>>) attributes {dimension_semantics = [], scalar_prefetch = 0 : i64, scratch_operands = 0 : i64, tpu.core_type = #tpu.core_type<tc>} {
    %c0 = arith.constant 0 : index
    %c0_0 = arith.constant 0 : index
    %0 = vector.load %arg0[%c0, %c0_0] : memref<16x150xf32, #tpu.memory_space<vmem>>, vector<16x150xf32>
    %c0_1 = arith.constant 0 : index
    %c0_2 = arith.constant 0 : index
    %1 = vector.load %arg1[%c0_1, %c0_2] : memref<150x512xf32, #tpu.memory_space<vmem>>, vector<150x512xf32>
    %cst = arith.constant dense<0.000000e+00> : vector<16x512xf32>
    %2 = tpu.matmul %0, %1, %cst {dimension_numbers = #tpu.dot_dimension_numbers<[1], [0], [0], [1], [0, 0, 1, 1], [], []>} : vector<16x150xf32>, vector<150x512xf32>, vector<16x512xf32> -> vector<16x512xf32>
    %cst_3 = arith.constant 0.000000e+00 : f32
    %3 = vector.broadcast %cst_3 : f32 to vector<16x512xf32>
    %4 = arith.maximumf %2, %3 : vector<16x512xf32>
    %c0_4 = arith.constant 0 : index
    %c0_5 = arith.constant 0 : index
    %5 = vector.load %arg2[%c0_4, %c0_5] : memref<16x1xf32, #tpu.memory_space<vmem>>, vector<16x1xf32>
    %6 = vector.broadcast %5 : vector<16x1xf32> to vector<16x512xf32>
    %7 = arith.mulf %4, %6 : vector<16x512xf32>
    %8 = vector.extract_strided_slice %7 {offsets = [0, 0], sizes = [16, 128], strides = [1, 1]} : vector<16x512xf32> to vector<16x128xf32>
    %9 = vector.extract_strided_slice %7 {offsets = [0, 128], sizes = [16, 128], strides = [1, 1]} : vector<16x512xf32> to vector<16x128xf32>
    %10 = arith.maximumf %8, %9 : vector<16x128xf32>
    %11 = vector.extract_strided_slice %7 {offsets = [0, 256], sizes = [16, 128], strides = [1, 1]} : vector<16x512xf32> to vector<16x128xf32>
    %12 = vector.extract_strided_slice %7 {offsets = [0, 384], sizes = [16, 128], strides = [1, 1]} : vector<16x512xf32> to vector<16x128xf32>
    %13 = arith.maximumf %11, %12 : vector<16x128xf32>
    %14 = arith.maximumf %10, %13 : vector<16x128xf32>
    %c0_6 = arith.constant 0 : index
    %c0_7 = arith.constant 0 : index
    %15 = vector.load %arg3[%c0_6, %c0_7] : memref<16x128xf32, #tpu.memory_space<vmem>>, vector<16x128xf32>
    tpu.vector_store %arg3[%c0_6, %c0_7], %14 {strides = array<i32>} : memref<16x128xf32, #tpu.memory_space<vmem>>, vector<16x128xf32>,
    return
  }
}

module attributes {stable_mosaic.version = 11 : i64} {
  func.func @_fc_stack_kernel(%arg0: i32, %arg1: memref<2x400xf32, #tpu.memory_space<vmem>>, %arg2: memref<400x120xf32, #tpu.memory_space<vmem>>, %arg3: memref<1x120xf32, #tpu.memory_space<vmem>>, %arg4: memref<120x84xf32, #tpu.memory_space<vmem>>, %arg5: memref<1x84xf32, #tpu.memory_space<vmem>>, %arg6: memref<84x10xf32, #tpu.memory_space<vmem>>, %arg7: memref<1x10xf32, #tpu.memory_space<vmem>>, %arg8: memref<2x10xf32, #tpu.memory_space<vmem>>) attributes {dimension_semantics = [#tpu.dimension_semantics<parallel>], iteration_bounds = array<i64: 1>, scalar_prefetch = 0 : i64, scratch_operands = 0 : i64, tpu.core_type = #tpu.core_type<tc>, window_params = [{transform_indices = @transform_0, window_bounds = array<i64: 2, 400>}, {pipeline_mode = #tpu.pipeline_mode<synchronous>, transform_indices = @transform_1, window_bounds = array<i64: 400, 120>}, {pipeline_mode = #tpu.pipeline_mode<synchronous>, transform_indices = @transform_2, window_bounds = array<i64: 1, 120>}, {pipeline_mode = #tpu.pipeline_mode<synchronous>, transform_indices = @transform_3, window_bounds = array<i64: 120, 84>}, {pipeline_mode = #tpu.pipeline_mode<synchronous>, transform_indices = @transform_4, window_bounds = array<i64: 1, 84>}, {pipeline_mode = #tpu.pipeline_mode<synchronous>, transform_indices = @transform_5, window_bounds = array<i64: 84, 10>}, {pipeline_mode = #tpu.pipeline_mode<synchronous>, transform_indices = @transform_6, window_bounds = array<i64: 1, 10>}, {transform_indices = @transform_7, window_bounds = array<i64: 2, 10>}]} {
    %c0 = arith.constant 0 : index
    %c0_0 = arith.constant 0 : index
    %0 = vector.load %arg1[%c0, %c0_0] : memref<2x400xf32, #tpu.memory_space<vmem>>, vector<2x400xf32>
    %c0_1 = arith.constant 0 : index
    %c0_2 = arith.constant 0 : index
    %1 = vector.load %arg2[%c0_1, %c0_2] : memref<400x120xf32, #tpu.memory_space<vmem>>, vector<400x120xf32>
    %cst = arith.constant dense<0.000000e+00> : vector<2x120xf32>
    %2 = tpu.matmul %0, %1, %cst {dimension_numbers = #tpu.dot_dimension_numbers<[1], [0], [0], [1], [0, 0, 1, 1], [], []>} : vector<2x400xf32>, vector<400x120xf32>, vector<2x120xf32> -> vector<2x120xf32>
    %cst_3 = arith.constant 0.000000e+00 : f32
    %3 = vector.broadcast %cst_3 : f32 to vector<2x120xf32>
    %4 = arith.maximumf %2, %3 : vector<2x120xf32>
    %c0_4 = arith.constant 0 : index
    %c0_5 = arith.constant 0 : index
    %5 = vector.load %arg3[%c0_4, %c0_5] : memref<1x120xf32, #tpu.memory_space<vmem>>, vector<1x120xf32>
    %6 = vector.broadcast %5 : vector<1x120xf32> to vector<2x120xf32>
    %7 = arith.mulf %4, %6 : vector<2x120xf32>
    %c0_6 = arith.constant 0 : index
    %c0_7 = arith.constant 0 : index
    %8 = vector.load %arg4[%c0_6, %c0_7] : memref<120x84xf32, #tpu.memory_space<vmem>>, vector<120x84xf32>
    %cst_8 = arith.constant dense<0.000000e+00> : vector<2x84xf32>
    %9 = tpu.matmul %7, %8, %cst_8 {dimension_numbers = #tpu.dot_dimension_numbers<[1], [0], [0], [1], [0, 0, 1, 1], [], []>} : vector<2x120xf32>, vector<120x84xf32>, vector<2x84xf32> -> vector<2x84xf32>
    %cst_9 = arith.constant 0.000000e+00 : f32
    %10 = vector.broadcast %cst_9 : f32 to vector<2x84xf32>
    %11 = arith.maximumf %9, %10 : vector<2x84xf32>
    %c0_10 = arith.constant 0 : index
    %c0_11 = arith.constant 0 : index
    %12 = vector.load %arg5[%c0_10, %c0_11] : memref<1x84xf32, #tpu.memory_space<vmem>>, vector<1x84xf32>
    %13 = vector.broadcast %12 : vector<1x84xf32> to vector<2x84xf32>
    %14 = arith.mulf %11, %13 : vector<2x84xf32>
    %c0_12 = arith.constant 0 : index
    %c0_13 = arith.constant 0 : index
    %15 = vector.load %arg6[%c0_12, %c0_13] : memref<84x10xf32, #tpu.memory_space<vmem>>, vector<84x10xf32>
    %cst_14 = arith.constant dense<0.000000e+00> : vector<2x10xf32>
    %16 = tpu.matmul %14, %15, %cst_14 {dimension_numbers = #tpu.dot_dimension_numbers<[1], [0], [0], [1], [0, 0, 1, 1], [], []>} : vector<2x84xf32>, vector<84x10xf32>, vector<2x10xf32> -> vector<2x10xf32>
    %c0_15 = arith.constant 0 : index
    %c0_16 = arith.constant 0 : index
    %17 = vector.load %arg7[%c0_15, %c0_16] : memref<1x10xf32, #tpu.memory_space<vmem>>, vector<1x10xf32>
    %18 = vector.broadcast %17 : vector<1x10xf32> to vector<2x10xf32>
    %19 = arith.addf %16, %18 : vector<2x10xf32>
    %c0_17 = arith.constant 0 : index
    %c0_18 = arith.constant 0 : index
    %20 = vector.load %arg8[%c0_17, %c0_18] : memref<2x10xf32, #tpu.memory_space<vmem>>, vector<2x10xf32>
    tpu.vector_store %arg8[%c0_17, %c0_18], %19 {strides = array<i32>} : memref<2x10xf32, #tpu.memory_space<vmem>>, vector<2x10xf32>,
    return
  }
  func.func @transform_0(%arg0: i32) -> (i32, i32) {
    %c0_i32 = arith.constant 0 : i32
    %c0_i32_0 = arith.constant 0 : i32
    return %arg0, %c0_i32 : i32, i32
  }
  func.func @transform_1(%arg0: i32) -> (i32, i32) {
    %c0_i32 = arith.constant 0 : i32
    %c0_i32_0 = arith.constant 0 : i32
    %c0_i32_1 = arith.constant 0 : i32
    return %c0_i32, %c0_i32_0 : i32, i32
  }
  func.func @transform_2(%arg0: i32) -> (i32, i32) {
    %c0_i32 = arith.constant 0 : i32
    %c0_i32_0 = arith.constant 0 : i32
    %c0_i32_1 = arith.constant 0 : i32
    return %c0_i32, %c0_i32_0 : i32, i32
  }
  func.func @transform_3(%arg0: i32) -> (i32, i32) {
    %c0_i32 = arith.constant 0 : i32
    %c0_i32_0 = arith.constant 0 : i32
    %c0_i32_1 = arith.constant 0 : i32
    return %c0_i32, %c0_i32_0 : i32, i32
  }
  func.func @transform_4(%arg0: i32) -> (i32, i32) {
    %c0_i32 = arith.constant 0 : i32
    %c0_i32_0 = arith.constant 0 : i32
    %c0_i32_1 = arith.constant 0 : i32
    return %c0_i32, %c0_i32_0 : i32, i32
  }
  func.func @transform_5(%arg0: i32) -> (i32, i32) {
    %c0_i32 = arith.constant 0 : i32
    %c0_i32_0 = arith.constant 0 : i32
    %c0_i32_1 = arith.constant 0 : i32
    return %c0_i32, %c0_i32_0 : i32, i32
  }
  func.func @transform_6(%arg0: i32) -> (i32, i32) {
    %c0_i32 = arith.constant 0 : i32
    %c0_i32_0 = arith.constant 0 : i32
    %c0_i32_1 = arith.constant 0 : i32
    return %c0_i32, %c0_i32_0 : i32, i32
  }
  func.func @transform_7(%arg0: i32) -> (i32, i32) {
    %c0_i32 = arith.constant 0 : i32
    %c0_i32_0 = arith.constant 0 : i32
    return %arg0, %c0_i32 : i32, i32
  }
}

</mosaic_0001>

<bundles_post_ra>
// kernel: lenet_forward.3
= control target key start
LH: loop header
LB: loop body
LE: loop exit
PB: predicated region body
PF: predicated region fallthrough
CT: control target
= control target key end

     0   :  { %vm179_vm0 = vcmask 1042432   ;;  %vm175_vm1 = vcmask 613376   ;;  %s1209_s1 = inlined_call_operand.vmem [shape: f32[75,2048], index: 1, kind: input, shape index: {}]   ;;  %s1210_s0 = inlined_call_operand.vmem [shape: f32[6,75], index: 0, kind: input, shape index: {}]   ;;  %s1211_s2 = inlined_call_operand.vmem [shape: f32[6,1], index: 2, kind: input, shape index: {}]   ;;  %s1212_s3 = inlined_call_operand.vmem [shape: f32[6,512], index: 3, kind: output, shape index: {}]  }
   0x1   :  { %v159_v0 = vld [vmem:[%s1209_s1 + $0x480] sm:$0x7]  ;;  %v160_v1 = vld [vmem:[%s1209_s1 + $0x488] sm:$0x7]  ;;  %v161_v2 = vld [vmem:[%s1209_s1 + $0x490] sm:$0x7] }
   0x2   :  { %606 = vmatpush.msk.msra.mxu0 %vm179_vm0, %v159_v0  ;;  %608 = vmatpush.msk.msra.mxu1 %vm179_vm0, %v160_v1  ;;  %v162_v3 = vld [vmem:[%s1209_s1 + $0x498] sm:$0x7]  ;;  %v143_v4 = vld [vmem:[%s1209_s1 + $0x400] sm:$0xff]  ;;  %v144_v5 = vld [vmem:[%s1209_s1 + $0x408] sm:$0xff] }
   0x3   :  { %610 = vmatpush.msk.msra.mxu2 %vm179_vm0, %v161_v2  ;;  %612 = vmatpush.msk.msra.mxu3 %vm179_vm0, %v162_v3  ;;  %v145_v6 = vld [vmem:[%s1209_s1 + $0x410] sm:$0xff]  ;;  %v146_v7 = vld [vmem:[%s1209_s1 + $0x418] sm:$0xff]  ;;  %v127_v8 = vld [vmem:[%s1209_s1 + $0x380] sm:$0xff] }
   0x4   :  { %235 = vmatpush.msra.mxu0 %v143_v4  ;;  %255 = vmatpush.msra.mxu1 %v144_v5  ;;  %v128_v9 = vld [vmem:[%s1209_s1 + $0x388] sm:$0xff]  ;;  %v129_v10 = vld [vmem:[%s1209_s1 + $0x390] sm:$0xff]  ;;  %v130_v11 = vld [vmem:[%s1209_s1 + $0x398] sm:$0xff] }
   0x5   :  { %275 = vmatpush.msra.mxu2 %v145_v6  ;;  %295 = vmatpush.msra.mxu3 %v146_v7  ;;  %v111_v12 = vld [vmem:[%s1209_s1 + $0x300] sm:$0xff]  ;;  %v112_v13 = vld [vmem:[%s1209_s1 + $0x308] sm:$0xff]  ;;  %v113_v14 = vld [vmem:[%s1209_s1 + $0x310] sm:$0xff] }
   0x6   :  { %236 = vmatpush.msra.mxu0 %v127_v8  ;;  %256 = vmatpush.msra.mxu1 %v128_v9  ;;  %v114_v15 = vld [vmem:[%s1209_s1 + $0x318] sm:$0xff]  ;;  %v95_v16 = vld [vmem:[%s1209_s1 + $0x280] sm:$0xff]  ;;  %v96_v17 = vld [vmem:[%s1209_s1 + $0x288] sm:$0xff] }
   0x7   :  { %276 = vmatpush.msra.mxu2 %v129_v10  ;;  %296 = vmatpush.msra.mxu3 %v130_v11  ;;  %v97_v18 = vld [vmem:[%s1209_s1 + $0x290] sm:$0xff]  ;;  %v98_v19 = vld [vmem:[%s1209_s1 + $0x298] sm:$0xff]  ;;  %v79_v20 = vld [vmem:[%s1209_s1 + $0x200] sm:$0xff] }
   0x8   :  { %237 = vmatpush.msra.mxu0 %v111_v12  ;;  %257 = vmatpush.msra.mxu1 %v112_v13  ;;  %v80_v21 = vld [vmem:[%s1209_s1 + $0x208] sm:$0xff]  ;;  %v81_v22 = vld [vmem:[%s1209_s1 + $0x210] sm:$0xff]  ;;  %v82_v23 = vld [vmem:[%s1209_s1 + $0x218] sm:$0xff] }
   0x9   :  { %277 = vmatpush.msra.mxu2 %v113_v14  ;;  %297 = vmatpush.msra.mxu3 %v114_v15  ;;  %v63_v24 = vld [vmem:[%s1209_s1 + $0x180] sm:$0xff]  ;;  %v64_v25 = vld [vmem:[%s1209_s1 + $0x188] sm:$0xff]  ;;  %v65_v26 = vld [vmem:[%s1209_s1 + $0x190] sm:$0xff] }
   0xa   :  { %238 = vmatpush.msra.mxu0 %v95_v16  ;;  %258 = vmatpush.msra.mxu1 %v96_v17  ;;  %v66_v27 = vld [vmem:[%s1209_s1 + $0x198] sm:$0xff]  ;;  %v47_v28 = vld [vmem:[%s1209_s1 + $0x100] sm:$0xff]  ;;  %v48_v29 = vld [vmem:[%s1209_s1 + $0x108] sm:$0xff] }
   0xb   :  { %278 = vmatpush.msra.mxu2 %v97_v18  ;;  %298 = vmatpush.msra.mxu3 %v98_v19  ;;  %v49_v30 = vld [vmem:[%s1209_s1 + $0x110] sm:$0xff]  ;;  %v50_v31 = vld [vmem:[%s1209_s1 + $0x118] sm:$0xff]  ;;  %v31_v32 = vld [vmem:[%s1209_s1 + $0x80] sm:$0xff] }
   0xc   :  { %239 = vmatpush.msra.mxu0 %v79_v20  ;;  %259 = vmatpush.msra.mxu1 %v80_v21  ;;  %v32_v33 = vld [vmem:[%s1209_s1 + $0x88] sm:$0xff]  ;;  %v33_v34 = vld [vmem:[%s1209_s1 + $0x90] sm:$0xff]  ;;  %v34_v35 = vld [vmem:[%s1209_s1 + $0x98] sm:$0xff] }
   0xd   :  { %279 = vmatpush.msra.mxu2 %v81_v22  ;;  %299 = vmatpush.msra.mxu3 %v82_v23  ;;  %v15_v36 = vld [vmem:[%s1209_s1] sm:$0xff]  ;;  %v16_v37 = vld [vmem:[%s1209_s1 + $0x8] sm:$0xff]  ;;  %v17_v38 = vld [vmem:[%s1209_s1 + $0x10] sm:$0xff] }
   0xe   :  { %240 = vmatpush.msra.mxu0 %v63_v24  ;;  %260 = vmatpush.msra.mxu1 %v64_v25  ;;  %v18_v39 = vld [vmem:[%s1209_s1 + $0x18] sm:$0xff]  ;;  %v163_v40 = vld [vmem:[%s1209_s1 + $0x4a0] sm:$0x7]  ;;  %v164_v41 = vld [vmem:[%s1209_s1 + $0x4a8] sm:$0x7] }
   0xf   :  { %280 = vmatpush.msra.mxu2 %v65_v26  ;;  %300 = vmatpush.msra.mxu3 %v66_v27  ;;  %v165_v42 = vld [vmem:[%s1209_s1 + $0x4b0] sm:$0x7]  ;;  %v166_v43 = vld [vmem:[%s1209_s1 + $0x4b8] sm:$0x7]  ;;  %v147_v44 = vld [vmem:[%s1209_s1 + $0x420] sm:$0xff] }
  0x10   :  { %241 = vmatpush.msra.mxu0 %v47_v28  ;;  %261 = vmatpush.msra.mxu1 %v48_v29  ;;  %v148_v45 = vld [vmem:[%s1209_s1 + $0x428] sm:$0xff]  ;;  %v149_v46 = vld [vmem:[%s1209_s1 + $0x430] sm:$0xff]  ;;  %v150_v47 = vld [vmem:[%s1209_s1 + $0x438] sm:$0xff] }
  0x11   :  { %281 = vmatpush.msra.mxu2 %v49_v30  ;;  %301 = vmatpush.msra.mxu3 %v50_v31  ;;  %v131_v48 = vld [vmem:[%s1209_s1 + $0x3a0] sm:$0xff]  ;;  %v132_v49 = vld [vmem:[%s1209_s1 + $0x3a8] sm:$0xff]  ;;  %v133_v50 = vld [vmem:[%s1209_s1 + $0x3b0] sm:$0xff] }
  0x12   :  { %242 = vmatpush.msra.mxu0 %v31_v32  ;;  %262 = vmatpush.msra.mxu1 %v32_v33  ;;  %v134_v51 = vld [vmem:[%s1209_s1 + $0x3b8] sm:$0xff]  ;;  %v115_v52 = vld [vmem:[%s1209_s1 + $0x320] sm:$0xff]  ;;  %v116_v53 = vld [vmem:[%s1209_s1 + $0x328] sm:$0xff] }
  0x13   :  { %282 = vmatpush.msra.mxu2 %v33_v34  ;;  %302 = vmatpush.msra.mxu3 %v34_v35  ;;  %v117_v54 = vld [vmem:[%s1209_s1 + $0x330] sm:$0xff]  ;;  %v118_v55 = vld [vmem:[%s1209_s1 + $0x338] sm:$0xff]  ;;  %v99_v56 = vld [vmem:[%s1209_s1 + $0x2a0] sm:$0xff] }
  0x14   :  { %243 = vmatpush.msra.mxu0 %v15_v36  ;;  %263 = vmatpush.msra.mxu1 %v16_v37  ;;  %v100_v57 = vld [vmem:[%s1209_s1 + $0x2a8] sm:$0xff]  ;;  %v101_v58 = vld [vmem:[%s1209_s1 + $0x2b0] sm:$0xff]  ;;  %v102_v59 = vld [vmem:[%s1209_s1 + $0x2b8] sm:$0xff] }
  0x15   :  { %283 = vmatpush.msra.mxu2 %v17_v38  ;;  %303 = vmatpush.msra.mxu3 %v18_v39  ;;  %v83_v60 = vld [vmem:[%s1209_s1 + $0x220] sm:$0xff]  ;;  %v84_v61 = vld [vmem:[%s1209_s1 + $0x228] sm:$0xff]  ;;  %v85_v62 = vld [vmem:[%s1209_s1 + $0x230] sm:$0xff] }
  0x16   :  { %614 = vmatpush.msk.msrb.mxu0 %vm179_vm0, %v163_v40  ;;  %616 = vmatpush.msk.msrb.mxu1 %vm179_vm0, %v164_v41  ;;  %v86_v63 = vld [vmem:[%s1209_s1 + $0x238] sm:$0xff]  ;;  %v864_v0 = vld [vmem:[%s1210_s0] sm:$0x3f]  ;;  %v68_v2 = vld [vmem:[%s1209_s1 + $0x1a8] sm:$0xff] }
  0x17   :  { %618 = vmatpush.msk.msrb.mxu2 %vm179_vm0, %v165_v42  ;;  %620 = vmatpush.msk.msrb.mxu3 %vm179_vm0, %v166_v43  ;;  %v67_v1 = vld [vmem:[%s1209_s1 + $0x1a0] sm:$0xff]  ;;  %v69_v3 = vld [vmem:[%s1209_s1 + $0x1b0] sm:$0xff]  ;;  %v70_v4 = vld [vmem:[%s1209_s1 + $0x1b8] sm:$0xff] }
  0x18   :  { %315 = vmatpush.msrb.mxu0 %v147_v44  ;;  %335 = vmatpush.msrb.mxu1 %v148_v45  ;;  %v51_v5 = vld [vmem:[%s1209_s1 + $0x120] sm:$0xff]  ;;  %v52_v6 = vld [vmem:[%s1209_s1 + $0x128] sm:$0xff]  ;;  %v53_v7 = vld [vmem:[%s1209_s1 + $0x130] sm:$0xff] }
  0x19   :  { %355 = vmatpush.msrb.mxu2 %v149_v46  ;;  %375 = vmatpush.msrb.mxu3 %v150_v47  ;;  %v54_v8 = vld [vmem:[%s1209_s1 + $0x138] sm:$0xff]  ;;  %v35_v9 = vld [vmem:[%s1209_s1 + $0xa0] sm:$0xff]  ;;  %v36_v10 = vld [vmem:[%s1209_s1 + $0xa8] sm:$0xff] }
  0x1a   :  { %316 = vmatpush.msrb.mxu0 %v131_v48  ;;  %336 = vmatpush.msrb.mxu1 %v132_v49  ;;  %v37_v11 = vld [vmem:[%s1209_s1 + $0xb0] sm:$0xff]  ;;  %v38_v12 = vld [vmem:[%s1209_s1 + $0xb8] sm:$0xff]  ;;  %v19_v13 = vld [vmem:[%s1209_s1 + $0x20] sm:$0xff] }
  0x1b   :  { %356 = vmatpush.msrb.mxu2 %v133_v50  ;;  %376 = vmatpush.msrb.mxu3 %v134_v51  ;;  %v20_v14 = vld [vmem:[%s1209_s1 + $0x28] sm:$0xff]  ;;  %v21_v15 = vld [vmem:[%s1209_s1 + $0x30] sm:$0xff]  ;;  %v22_v16 = vld [vmem:[%s1209_s1 + $0x38] sm:$0xff] }
  0x1c   :  { %317 = vmatpush.msrb.mxu0 %v115_v52  ;;  %337 = vmatpush.msrb.mxu1 %v116_v53  ;;  %v167_v17 = vld [vmem:[%s1209_s1 + $0x4c0] sm:$0x7]  ;;  %v168_v18 = vld [vmem:[%s1209_s1 + $0x4c8] sm:$0x7]  ;;  %v169_v19 = vld [vmem:[%s1209_s1 + $0x4d0] sm:$0x7] }
  0x1d   :  { %357 = vmatpush.msrb.mxu2 %v117_v54  ;;  %377 = vmatpush.msrb.mxu3 %v118_v55  ;;  %v170_v20 = vld [vmem:[%s1209_s1 + $0x4d8] sm:$0x7]  ;;  %v151_v21 = vld [vmem:[%s1209_s1 + $0x440] sm:$0xff]  ;;  %v152_v22 = vld [vmem:[%s1209_s1 + $0x448] sm:$0xff] }
  0x1e   :  { %318 = vmatpush.msrb.mxu0 %v99_v56  ;;  %338 = vmatpush.msrb.mxu1 %v100_v57  ;;  %v153_v23 = vld [vmem:[%s1209_s1 + $0x450] sm:$0xff]  ;;  %v154_v24 = vld [vmem:[%s1209_s1 + $0x458] sm:$0xff]  ;;  %v135_v25 = vld [vmem:[%s1209_s1 + $0x3c0] sm:$0xff] }
  0x1f   :  { %358 = vmatpush.msrb.mxu2 %v101_v58  ;;  %378 = vmatpush.msrb.mxu3 %v102_v59  ;;  %v136_v26 = vld [vmem:[%s1209_s1 + $0x3c8] sm:$0xff]  ;;  %v137_v27 = vld [vmem:[%s1209_s1 + $0x3d0] sm:$0xff]  ;;  %v138_v28 = vld [vmem:[%s1209_s1 + $0x3d8] sm:$0xff]  ;;  %v640_v58 = vmov 0  }
  0x20   :  { %319 = vmatpush.msrb.mxu0 %v83_v60  ;;  %339 = vmatpush.msrb.mxu1 %v84_v61  ;;  %v119_v29 = vld [vmem:[%s1209_s1 + $0x340] sm:$0xff]  ;;  %v120_v30 = vld [vmem:[%s1209_s1 + $0x348] sm:$0xff]  ;;  %v121_v31 = vld [vmem:[%s1209_s1 + $0x350] sm:$0xff] }
  0x21   :  { %359 = vmatpush.msrb.mxu2 %v85_v62  ;;  %379 = vmatpush.msrb.mxu3 %v86_v63  ;;  %v122_v32 = vld [vmem:[%s1209_s1 + $0x358] sm:$0xff]  ;;  %v103_v33 = vld [vmem:[%s1209_s1 + $0x2c0] sm:$0xff]  ;;  %v104_v34 = vld [vmem:[%s1209_s1 + $0x2c8] sm:$0xff] }
  0x22   :  { %611 = vmatmul.msk.f32.vlgmr.msra.gmra.mxu2 %vm175_vm1, %v864_v0  ;;  %613 = vmatmul.msk.f32.vlgmr.msra.gmra.mxu3 %vm175_vm1, %v864_v0  ;;  %v105_v35 = vld [vmem:[%s1209_s1 + $0x2d0] sm:$0xff]  ;;  %v106_v36 = vld [vmem:[%s1209_s1 + $0x2d8] sm:$0xff]  ;;  %v87_v37 = vld [vmem:[%s1209_s1 + $0x240] sm:$0xff] }
  0x23   :  { %320 = vmatpush.msrb.mxu0 %v67_v1  ;;  %340 = vmatpush.msrb.mxu1 %v68_v2  ;;  %v88_v38 = vld [vmem:[%s1209_s1 + $0x248] sm:$0xff]  ;;  %v89_v39 = vld [vmem:[%s1209_s1 + $0x250] sm:$0xff]  ;;  %v90_v40 = vld [vmem:[%s1209_s1 + $0x258] sm:$0xff] }
  0x24   :  { %360 = vmatpush.msrb.mxu2 %v69_v3  ;;  %380 = vmatpush.msrb.mxu3 %v70_v4  ;;  %v71_v41 = vld [vmem:[%s1209_s1 + $0x1c0] sm:$0xff]  ;;  %v72_v42 = vld [vmem:[%s1209_s1 + $0x1c8] sm:$0xff]  ;;  %v73_v43 = vld [vmem:[%s1209_s1 + $0x1d0] sm:$0xff] }
  0x25   :  { %321 = vmatpush.msrb.mxu0 %v51_v5  ;;  %341 = vmatpush.msrb.mxu1 %v52_v6  ;;  %v74_v44 = vld [vmem:[%s1209_s1 + $0x1d8] sm:$0xff]  ;;  %v55_v45 = vld [vmem:[%s1209_s1 + $0x140] sm:$0xff]  ;;  %v56_v46 = vld [vmem:[%s1209_s1 + $0x148] sm:$0xff] }
  0x26   :  { %361 = vmatpush.msrb.mxu2 %v53_v7  ;;  %381 = vmatpush.msrb.mxu3 %v54_v8  ;;  %v57_v47 = vld [vmem:[%s1209_s1 + $0x150] sm:$0xff]  ;;  %v58_v48 = vld [vmem:[%s1209_s1 + $0x158] sm:$0xff]  ;;  %v39_v49 = vld [vmem:[%s1209_s1 + $0xc0] sm:$0xff] }
  0x27   :  { %322 = vmatpush.msrb.mxu0 %v35_v9  ;;  %342 = vmatpush.msrb.mxu1 %v36_v10  ;;  %v40_v50 = vld [vmem:[%s1209_s1 + $0xc8] sm:$0xff]  ;;  %v41_v51 = vld [vmem:[%s1209_s1 + $0xd0] sm:$0xff]  ;;  %v42_v52 = vld [vmem:[%s1209_s1 + $0xd8] sm:$0xff] }
  0x28   :  { %362 = vmatpush.msrb.mxu2 %v37_v11  ;;  %382 = vmatpush.msrb.mxu3 %v38_v12  ;;  %v23_v53 = vld [vmem:[%s1209_s1 + $0x40] sm:$0xff]  ;;  %v24_v54 = vld [vmem:[%s1209_s1 + $0x48] sm:$0xff]  ;;  %v25_v55 = vld [vmem:[%s1209_s1 + $0x50] sm:$0xff] }
  0x29   :  { %607 = vmatmul.msk.f32.vlgmr.msra.gmra.mxu0 %vm175_vm1, %v864_v0  ;;  %609 = vmatmul.msk.f32.vlgmr.msra.gmra.mxu1 %vm175_vm1, %v864_v0  ;;  %v26_v56 = vld [vmem:[%s1209_s1 + $0x58] sm:$0xff]  ;;  %v564_v57 = vld [vmem:[%s1211_s2] sm:$0x3f]  ;;  %v172_v60 = vld [vmem:[%s1209_s1 + $0x4e8] sm:$0x7] }
  0x2a   :  { %323 = vmatpush.msrb.mxu0 %v19_v13  ;;  %343 = vmatpush.msrb.mxu1 %v20_v14  ;;  %v171_v59 = vld [vmem:[%s1209_s1 + $0x4e0] sm:$0x7]  ;;  %v173_v61 = vld [vmem:[%s1209_s1 + $0x4f0] sm:$0x7]  ;;  %v174_v62 = vld [vmem:[%s1209_s1 + $0x4f8] sm:$0x7] }
  0x2b   :  { %363 = vmatpush.msrb.mxu2 %v21_v15  ;;  %383 = vmatpush.msrb.mxu3 %v22_v16  ;;  %v155_v63 = vld [vmem:[%s1209_s1 + $0x460] sm:$0xff]  ;;  %v156_v1 = vld [vmem:[%s1209_s1 + $0x468] sm:$0xff]  ;;  %v157_v2 = vld [vmem:[%s1209_s1 + $0x470] sm:$0xff] }
  0x2c   :  { %619 = vmatmul.msk.f32.vlgmr.msrb.gmra.mxu2 %vm175_vm1, %v864_v0  ;;  %621 = vmatmul.msk.f32.vlgmr.msrb.gmra.mxu3 %vm175_vm1, %v864_v0  ;;  %v158_v3 = vld [vmem:[%s1209_s1 + $0x478] sm:$0xff]  ;;  %v139_v4 = vld [vmem:[%s1209_s1 + $0x3e0] sm:$0xff]  ;;  %v140_v5 = vld [vmem:[%s1209_s1 + $0x3e8] sm:$0xff] }
  0x2d   :  { %622 = vmatpush.msk.msra.mxu0 %vm179_vm0, %v167_v17  ;;  %624 = vmatpush.msk.msra.mxu1 %vm179_vm0, %v168_v18  ;;  %v141_v6 = vld [vmem:[%s1209_s1 + $0x3f0] sm:$0xff]  ;;  %v142_v7 = vld [vmem:[%s1209_s1 + $0x3f8] sm:$0xff]  ;;  %v123_v8 = vld [vmem:[%s1209_s1 + $0x360] sm:$0xff] }
  0x2e   :  { %626 = vmatpush.msk.msra.mxu2 %vm179_vm0, %v169_v19  ;;  %628 = vmatpush.msk.msra.mxu3 %vm179_vm0, %v170_v20  ;;  %v124_v9 = vld [vmem:[%s1209_s1 + $0x368] sm:$0xff]  ;;  %v125_v10 = vld [vmem:[%s1209_s1 + $0x370] sm:$0xff]  ;;  %v126_v11 = vld [vmem:[%s1209_s1 + $0x378] sm:$0xff] }
  0x2f   :  { %395 = vmatpush.msra.mxu0 %v151_v21  ;;  %415 = vmatpush.msra.mxu1 %v152_v22  ;;  %v107_v12 = vld [vmem:[%s1209_s1 + $0x2e0] sm:$0xff]  ;;  %v108_v13 = vld [vmem:[%s1209_s1 + $0x2e8] sm:$0xff]  ;;  %v109_v14 = vld [vmem:[%s1209_s1 + $0x2f0] sm:$0xff] }
  0x30   :  { %435 = vmatpush.msra.mxu2 %v153_v23  ;;  %455 = vmatpush.msra.mxu3 %v154_v24  ;;  %v110_v15 = vld [vmem:[%s1209_s1 + $0x2f8] sm:$0xff]  ;;  %v91_v16 = vld [vmem:[%s1209_s1 + $0x260] sm:$0xff]  ;;  %v92_v17 = vld [vmem:[%s1209_s1 + $0x268] sm:$0xff] }
  0x31   :  { %396 = vmatpush.msra.mxu0 %v135_v25  ;;  %416 = vmatpush.msra.mxu1 %v136_v26  ;;  %v93_v18 = vld [vmem:[%s1209_s1 + $0x270] sm:$0xff]  ;;  %v94_v19 = vld [vmem:[%s1209_s1 + $0x278] sm:$0xff]  ;;  %v75_v20 = vld [vmem:[%s1209_s1 + $0x1e0] sm:$0xff] }
  0x32   :  { %436 = vmatpush.msra.mxu2 %v137_v27  ;;  %456 = vmatpush.msra.mxu3 %v138_v28  ;;  %v76_v21 = vld [vmem:[%s1209_s1 + $0x1e8] sm:$0xff]  ;;  %v77_v22 = vld [vmem:[%s1209_s1 + $0x1f0] sm:$0xff]  ;;  %v78_v23 = vld [vmem:[%s1209_s1 + $0x1f8] sm:$0xff] }
  0x33   :  { %615 = vmatmul.msk.f32.vlgmr.msrb.gmra.mxu0 %vm175_vm1, %v864_v0  ;;  %617 = vmatmul.msk.f32.vlgmr.msrb.gmra.mxu1 %vm175_vm1, %v864_v0  ;;  %v59_v24 = vld [vmem:[%s1209_s1 + $0x160] sm:$0xff]  ;;  %v60_v25 = vld [vmem:[%s1209_s1 + $0x168] sm:$0xff]  ;;  %v61_v26 = vld [vmem:[%s1209_s1 + $0x170] sm:$0xff] }
  0x34   :  { %397 = vmatpush.msra.mxu0 %v119_v29  ;;  %417 = vmatpush.msra.mxu1 %v120_v30  ;;  %v62_v27 = vld [vmem:[%s1209_s1 + $0x178] sm:$0xff]  ;;  %v43_v28 = vld [vmem:[%s1209_s1 + $0xe0] sm:$0xff]  ;;  %v44_v29 = vld [vmem:[%s1209_s1 + $0xe8] sm:$0xff] }
  0x35   :  { %437 = vmatpush.msra.mxu2 %v121_v31  ;;  %457 = vmatpush.msra.mxu3 %v122_v32  ;;  %v45_v30 = vld [vmem:[%s1209_s1 + $0xf0] sm:$0xff]  ;;  %v46_v31 = vld [vmem:[%s1209_s1 + $0xf8] sm:$0xff]  ;;  %v27_v32 = vld [vmem:[%s1209_s1 + $0x60] sm:$0xff] }
  0x36   :  { %398 = vmatpush.msra.mxu0 %v103_v33  ;;  %418 = vmatpush.msra.mxu1 %v104_v34  ;;  %v28_v33 = vld [vmem:[%s1209_s1 + $0x68] sm:$0xff]  ;;  %v29_v34 = vld [vmem:[%s1209_s1 + $0x70] sm:$0xff] }
  0x37   :  { %438 = vmatpush.msra.mxu2 %v105_v35  ;;  %458 = vmatpush.msra.mxu3 %v106_v36  ;;  %v30_v35 = vld [vmem:[%s1209_s1 + $0x78] sm:$0xff] }
  0x38   :  { %399 = vmatpush.msra.mxu0 %v87_v37  ;;  %419 = vmatpush.msra.mxu1 %v88_v38 }
  0x39   :  { %439 = vmatpush.msra.mxu2 %v89_v39  ;;  %459 = vmatpush.msra.mxu3 %v90_v40 }
  0x3a   :  { %400 = vmatpush.msra.mxu0 %v71_v41  ;;  %420 = vmatpush.msra.mxu1 %v72_v42 }
  0x3b   :  { %440 = vmatpush.msra.mxu2 %v73_v43  ;;  %460 = vmatpush.msra.mxu3 %v74_v44 }
  0x3c   :  { %401 = vmatpush.msra.mxu0 %v55_v45  ;;  %421 = vmatpush.msra.mxu1 %v56_v46 }
  0x3d   :  { %441 = vmatpush.msra.mxu2 %v57_v47  ;;  %461 = vmatpush.msra.mxu3 %v58_v48 }
  0x3e   :  { %402 = vmatpush.msra.mxu0 %v39_v49  ;;  %422 = vmatpush.msra.mxu1 %v40_v50 }
  0x3f   :  { %442 = vmatpush.msra.mxu2 %v41_v51  ;;  %462 = vmatpush.msra.mxu3 %v42_v52 }
  0x40   :  { %639 = vset.pattern.permute.xlu0 %v640_v58  ;;  %403 = vmatpush.msra.mxu0 %v23_v53 }
  0x41   :  { %423 = vmatpush.msra.mxu1 %v24_v54  ;;  %443 = vmatpush.msra.mxu2 %v25_v55 }
  0x42   :  { %463 = vmatpush.msra.mxu3 %v26_v56  ;;  %567 = vperm.xlu0 %639, %v564_v57  }
  0x43   :  { %630 = vmatpush.msk.msrb.mxu0 %vm179_vm0, %v171_v59  ;;  %632 = vmatpush.msk.msrb.mxu1 %vm179_vm0, %v172_v60 }
  0x44   :  { %634 = vmatpush.msk.msrb.mxu2 %vm179_vm0, %v173_v61  ;;  %636 = vmatpush.msk.msrb.mxu3 %vm179_vm0, %v174_v62 }
  0x45   :  { %475 = vmatpush.msrb.mxu0 %v155_v63  ;;  %495 = vmatpush.msrb.mxu1 %v156_v1 }
  0x46   :  { %515 = vmatpush.msrb.mxu2 %v157_v2  ;;  %535 = vmatpush.msrb.mxu3 %v158_v3 }
  0x47   :  { %476 = vmatpush.msrb.mxu0 %v139_v4  ;;  %496 = vmatpush.msrb.mxu1 %v140_v5 }
  0x48   :  { %516 = vmatpush.msrb.mxu2 %v141_v6  ;;  %536 = vmatpush.msrb.mxu3 %v142_v7 }
  0x49   :  { %477 = vmatpush.msrb.mxu0 %v123_v8  ;;  %497 = vmatpush.msrb.mxu1 %v124_v9 }
  0x4a   :  { %517 = vmatpush.msrb.mxu2 %v125_v10  ;;  %537 = vmatpush.msrb.mxu3 %v126_v11 }
  0x4b   :  { %478 = vmatpush.msrb.mxu0 %v107_v12  ;;  %498 = vmatpush.msrb.mxu1 %v108_v13 }
  0x4c   :  { %518 = vmatpush.msrb.mxu2 %v109_v14  ;;  %538 = vmatpush.msrb.mxu3 %v110_v15 }
  0x4d   :  { %479 = vmatpush.msrb.mxu0 %v91_v16  ;;  %499 = vmatpush.msrb.mxu1 %v92_v17 }
  0x4e   :  { %519 = vmatpush.msrb.mxu2 %v93_v18  ;;  %539 = vmatpush.msrb.mxu3 %v94_v19 }
  0x4f   :  { %623 = vmatmul.msk.f32.vlgmr.msra.gmra.mxu0 %vm175_vm1, %v864_v0  ;;  %625 = vmatmul.msk.f32.vlgmr.msra.gmra.mxu1 %vm175_vm1, %v864_v0 }
  0x50   :  { %627 = vmatmul.msk.f32.vlgmr.msra.gmra.mxu2 %vm175_vm1, %v864_v0  ;;  %629 = vmatmul.msk.f32.vlgmr.msra.gmra.mxu3 %vm175_vm1, %v864_v0 }
  0x51   :  { %480 = vmatpush.msrb.mxu0 %v75_v20  ;;  %500 = vmatpush.msrb.mxu1 %v76_v21 }
  0x52   :  { %520 = vmatpush.msrb.mxu2 %v77_v22  ;;  %540 = vmatpush.msrb.mxu3 %v78_v23 }
  0x53   :  { %481 = vmatpush.msrb.mxu0 %v59_v24  ;;  %501 = vmatpush.msrb.mxu1 %v60_v25 }
  0x54   :  { %521 = vmatpush.msrb.mxu2 %v61_v26  ;;  %541 = vmatpush.msrb.mxu3 %v62_v27 }
  0x55   :  { %482 = vmatpush.msrb.mxu0 %v43_v28  ;;  %502 = vmatpush.msrb.mxu1 %v44_v29 }
  0x56   :  { %522 = vmatpush.msrb.mxu2 %v45_v30  ;;  %542 = vmatpush.msrb.mxu3 %v46_v31 }
  0x57   :  { %483 = vmatpush.msrb.mxu0 %v27_v32  ;;  %503 = vmatpush.msrb.mxu1 %v28_v33 }
  0x58   :  { %523 = vmatpush.msrb.mxu2 %v29_v34  ;;  %543 = vmatpush.msrb.mxu3 %v30_v35 }
  0x59   :  { %631 = vmatmul.msk.f32.vlgmr.msrb.gmra.mxu0 %vm175_vm1, %v864_v0  ;;  %633 = vmatmul.msk.f32.vlgmr.msrb.gmra.mxu1 %vm175_vm1, %v864_v0 }
  0x5a   :  { %635 = vmatmul.msk.f32.vlgmr.msrb.gmra.mxu2 %vm175_vm1, %v864_v0  ;;  %637 = vmatmul.msk.f32.vlgmr.msrb.gmra.mxu3 %vm175_vm1, %v864_v0 }
  0xa5   :  { %v285_v38 = vpop.f32.mrf.mxu2  ;;  %v305_v39 = vpop.f32.mrf.mxu3 }
  0xa6   :  { %v245_v36 = vpop.f32.mrf.mxu0  ;;  %v265_v37 = vpop.f32.mrf.mxu1  ;;  %v550_v62 = vmax.f32 %v285_v38, 0.0  ;;  %v551_v5 = vmax.f32 %v305_v39, 0.0 }
  0xa7   :  { %v548_v46 = vmax.f32 %v245_v36, 0.0  ;;  %v549_v49 = vmax.f32 %v265_v37, 0.0 }
  0xaf   :  { %v365_v42 = vpop.f32.mrf.mxu2  ;;  %v385_v43 = vpop.f32.mrf.mxu3 }
  0xb0   :  { %v325_v40 = vpop.f32.mrf.mxu0  ;;  %v345_v41 = vpop.f32.mrf.mxu1  ;;  %v554_v63 = vmax.f32 %v365_v42, 0.0  ;;  %v555_v6 = vmax.f32 %v385_v43, 0.0 }
  0xb1   :  { %v552_v47 = vmax.f32 %v325_v40, 0.0  ;;  %v553_v50 = vmax.f32 %v345_v41, 0.0 }
  0xb4   :  { %v568_v48 = vpop.permute.xlu0 %567 }
  0xb5   :  { %v570_v55 = vmul.f32 %v568_v48, %v548_v46  ;;  %v574_v56 = vmul.f32 %v568_v48, %v552_v47  ;;  %v571_v60 = vmul.f32 %v568_v48, %v549_v49  ;;  %v575_v61 = vmul.f32 %v568_v48, %v553_v50 }
  0xb6   :  { %v572_v16 = vmul.f32 %v568_v48, %v550_v62  ;;  %v576_v17 = vmul.f32 %v568_v48, %v554_v63  ;;  %v573_v21 = vmul.f32 %v568_v48, %v551_v5  ;;  %v577_v22 = vmul.f32 %v568_v48, %v555_v6 }
  0xb7   :  { %v586_v7 = vmax.f32 %v570_v55, %v574_v56  ;;  %v587_v9 = vmax.f32 %v571_v60, %v575_v61 }
  0xb8   :  { %v588_v27 = vmax.f32 %v572_v16, %v576_v17  ;;  %v589_v29 = vmax.f32 %v573_v21, %v577_v22 }
  0xcc   :  { %v405_v44 = vpop.f32.mrf.mxu0  ;;  %v425_v45 = vpop.f32.mrf.mxu1 }
  0xcd   :  { %v556_v53 = vmax.f32 %v405_v44, 0.0  ;;  %v557_v54 = vmax.f32 %v425_v45, 0.0 }
  0xcf   :  { %v578_v1 = vmul.f32 %v568_v48, %v556_v53  ;;  %v579_v2 = vmul.f32 %v568_v48, %v557_v54 }
  0xd3   :  { %v445_v51 = vpop.f32.mrf.mxu2  ;;  %v465_v52 = vpop.f32.mrf.mxu3 }
  0xd4   :  { %v558_v11 = vmax.f32 %v445_v51, 0.0  ;;  %v559_v12 = vmax.f32 %v465_v52, 0.0 }
  0xd6   :  { %v485_v0 = vpop.f32.mrf.mxu0  ;;  %v505_v57 = vpop.f32.mrf.mxu1  ;;  %v580_v23 = vmul.f32 %v568_v48, %v558_v11  ;;  %v581_v24 = vmul.f32 %v568_v48, %v559_v12 }
  0xd7   :  { %v560_v58 = vmax.f32 %v485_v0, 0.0  ;;  %v561_v59 = vmax.f32 %v505_v57, 0.0 }
  0xd9   :  { %v582_v3 = vmul.f32 %v568_v48, %v560_v58  ;;  %v583_v4 = vmul.f32 %v568_v48, %v561_v59 }
  0xdb   :  { %v590_v8 = vmax.f32 %v578_v1, %v582_v3  ;;  %v591_v10 = vmax.f32 %v579_v2, %v583_v4 }
  0xdd   :  { %v594_v13 = vmax.f32 %v586_v7, %v590_v8  ;;  %v595_v14 = vmax.f32 %v587_v9, %v591_v10  ;;  %v525_v15 = vpop.f32.mrf.mxu2  ;;  %v545_v18 = vpop.f32.mrf.mxu3 }
  0xde   :  { %v562_v19 = vmax.f32 %v525_v15, 0.0  ;;  %v563_v20 = vmax.f32 %v545_v18, 0.0 }
  0xdf   :  { %598 = vst [vmem:[%s1212_s3] sm:$0x3f] %v594_v13 }
  0xe0   :  { %599 = vst [vmem:[%s1212_s3 + $0x8] sm:$0x3f] %v595_v14  ;;  %v584_v25 = vmul.f32 %v568_v48, %v562_v19  ;;  %v585_v26 = vmul.f32 %v568_v48, %v563_v20 }
  0xe2   :  { %v592_v28 = vmax.f32 %v580_v23, %v584_v25  ;;  %v593_v30 = vmax.f32 %v581_v24, %v585_v26 }
  0xe4   :  { %v596_v31 = vmax.f32 %v588_v27, %v592_v28  ;;  %v597_v32 = vmax.f32 %v589_v29, %v593_v30 }
  0xe6   :  { %600 = vst [vmem:[%s1212_s3 + $0x10] sm:$0x3f] %v596_v31 }
  0xe7   :  { %601 = vst [vmem:[%s1212_s3 + $0x18] sm:$0x3f] %v597_v32 }

// kernel: lenet_forward.4
= control target key start
LH: loop header
LB: loop body
LE: loop exit
PB: predicated region body
PF: predicated region fallthrough
CT: control target
= control target key end

     0   :  { %vm101_vm0 = vcmask 1045504   ;;  %vm94_vm1 = vcmask 179200   ;;  %s669_s1 = inlined_call_operand.vmem [shape: f32[150,512], index: 1, kind: input, shape index: {}]   ;;  %s670_s0 = inlined_call_operand.vmem [shape: f32[16,150], index: 0, kind: input, shape index: {}]   ;;  %s671_s2 = inlined_call_operand.vmem [shape: f32[16,1], index: 2, kind: input, shape index: {}]   ;;  %s672_s3 = inlined_call_operand.vmem [shape: f32[16,128], index: 3, kind: output, shape index: {}]  }
   0x1   :  { %v78_v0 = vld [vmem:[%s669_s1 + $0x1e0] sm:$0xff]  ;;  %v79_v2 = vld [vmem:[%s669_s1 + $0x1e8] sm:$0xff]  ;;  %v80_v12 = vld [vmem:[%s669_s1 + $0x1f0] sm:$0xff] }
   0x2   :  { %v90_v1 = vld [vmem:[%s669_s1 + $0x240] sm:$0x3f]  ;;  %114 = vmatpush.msra.mxu0 %v78_v0  ;;  %v392_v3 = vld [vmem:[%s669_s1 + $0x248] sm:$0x3f]  ;;  %160 = vmatpush.msra.mxu2 %v79_v2  ;;  %v92_v13 = vld [vmem:[%s669_s1 + $0x250] sm:$0x3f] }
   0x3   :  { %338 = vmatpush.msk.msra.mxu1 %vm101_vm0, %v90_v1  ;;  %v74_v4 = vld [vmem:[%s669_s1 + $0x1c0] sm:$0xff]  ;;  %350 = vmatpush.msk.msra.mxu3 %vm101_vm0, %v392_v3  ;;  %v75_v6 = vld [vmem:[%s669_s1 + $0x1c8] sm:$0xff]  ;;  %v76_v16 = vld [vmem:[%s669_s1 + $0x1d0] sm:$0xff] }
   0x4   :  { %v86_v5 = vld [vmem:[%s669_s1 + $0x220] sm:$0xff]  ;;  %v408_v7 = vld [vmem:[%s669_s1 + $0x228] sm:$0xff]  ;;  %115 = vmatpush.msra.mxu0 %v74_v4  ;;  %161 = vmatpush.msra.mxu2 %v75_v6  ;;  %v88_v17 = vld [vmem:[%s669_s1 + $0x230] sm:$0xff] }
   0x5   :  { %v70_v8 = vld [vmem:[%s669_s1 + $0x1a0] sm:$0xff]  ;;  %151 = vmatpush.msra.mxu1 %v86_v5  ;;  %v71_v10 = vld [vmem:[%s669_s1 + $0x1a8] sm:$0xff]  ;;  %351 = vmatpush.msra.mxu3 %v408_v7  ;;  %v72_v20 = vld [vmem:[%s669_s1 + $0x1b0] sm:$0xff] }
   0x6   :  { %v82_v9 = vld [vmem:[%s669_s1 + $0x200] sm:$0xff]  ;;  %v422_v11 = vld [vmem:[%s669_s1 + $0x208] sm:$0xff]  ;;  %116 = vmatpush.msra.mxu0 %v70_v8  ;;  %162 = vmatpush.msra.mxu2 %v71_v10  ;;  %v84_v21 = vld [vmem:[%s669_s1 + $0x210] sm:$0xff] }
   0x7   :  { %152 = vmatpush.msra.mxu1 %v82_v9  ;;  %v66_v14 = vld [vmem:[%s669_s1 + $0x180] sm:$0xff]  ;;  %v67_v15 = vld [vmem:[%s669_s1 + $0x188] sm:$0xff]  ;;  %352 = vmatpush.msra.mxu3 %v422_v11  ;;  %v466_v24 = vld [vmem:[%s670_s0 + $0x18] sm:$0xff] }
   0x8   :  { %v62_v18 = vld [vmem:[%s669_s1 + $0x160] sm:$0xff]  ;;  %v63_v19 = vld [vmem:[%s669_s1 + $0x168] sm:$0xff]  ;;  %117 = vmatpush.msra.mxu0 %v66_v14  ;;  %163 = vmatpush.msra.mxu2 %v67_v15  ;;  %v68_v25 = vld [vmem:[%s669_s1 + $0x190] sm:$0xff] }
   0x9   :  { %206 = vmatpush.msrb.mxu1 %v80_v12  ;;  %344 = vmatpush.msk.msrb.mxu3 %vm101_vm0, %v92_v13  ;;  %v58_v22 = vld [vmem:[%s669_s1 + $0x140] sm:$0xff]  ;;  %v59_v23 = vld [vmem:[%s669_s1 + $0x148] sm:$0xff]  ;;  %v81_v26 = vld [vmem:[%s669_s1 + $0x1f8] sm:$0xff] }
   0xa   :  { %118 = vmatpush.msra.mxu0 %v62_v18  ;;  %164 = vmatpush.msra.mxu2 %v63_v19  ;;  %v54_v27 = vld [vmem:[%s669_s1 + $0x120] sm:$0xff]  ;;  %v55_v28 = vld [vmem:[%s669_s1 + $0x128] sm:$0xff]  ;;  %v64_v29 = vld [vmem:[%s669_s1 + $0x170] sm:$0xff]  ;;  %v358_v18 = vmov 0  }
   0xb   :  { %207 = vmatpush.msrb.mxu1 %v76_v16  ;;  %243 = vmatpush.msrb.mxu3 %v88_v17  ;;  %v77_v30 = vld [vmem:[%s669_s1 + $0x1d8] sm:$0xff]  ;;  %v50_v31 = vld [vmem:[%s669_s1 + $0x100] sm:$0xff]  ;;  %v51_v32 = vld [vmem:[%s669_s1 + $0x108] sm:$0xff] }
   0xc   :  { %119 = vmatpush.msra.mxu0 %v58_v22  ;;  %165 = vmatpush.msra.mxu2 %v59_v23  ;;  %v60_v33 = vld [vmem:[%s669_s1 + $0x150] sm:$0xff]  ;;  %v73_v34 = vld [vmem:[%s669_s1 + $0x1b8] sm:$0xff]  ;;  %v46_v35 = vld [vmem:[%s669_s1 + $0xe0] sm:$0xff] }
   0xd   :  { %208 = vmatpush.msrb.mxu1 %v72_v20  ;;  %244 = vmatpush.msrb.mxu3 %v84_v21  ;;  %v47_v36 = vld [vmem:[%s669_s1 + $0xe8] sm:$0xff]  ;;  %v56_v37 = vld [vmem:[%s669_s1 + $0x130] sm:$0xff]  ;;  %v69_v38 = vld [vmem:[%s669_s1 + $0x198] sm:$0xff] }
   0xe   :  { %343 = vmatmul.msk.f32.vlgmr.msra.gmra.mxu3 %vm94_vm1, %v466_v24  ;;  %120 = vmatpush.msra.mxu0 %v54_v27  ;;  %v42_v39 = vld [vmem:[%s669_s1 + $0xc0] sm:$0xff]  ;;  %v43_v40 = vld [vmem:[%s669_s1 + $0xc8] sm:$0xff]  ;;  %v52_v41 = vld [vmem:[%s669_s1 + $0x110] sm:$0xff] }
   0xf   :  { %209 = vmatpush.msrb.mxu1 %v68_v25  ;;  %252 = vmatpush.msra.mxu3 %v81_v26  ;;  %v65_v42 = vld [vmem:[%s669_s1 + $0x178] sm:$0xff]  ;;  %v38_v43 = vld [vmem:[%s669_s1 + $0xa0] sm:$0xff]  ;;  %v530_v44 = vld [vmem:[%s670_s0 + $0x8] sm:$0xff] }
  0x10   :  { %166 = vmatpush.msra.mxu2 %v55_v28  ;;  %121 = vmatpush.msra.mxu0 %v50_v31  ;;  %v39_v45 = vld [vmem:[%s669_s1 + $0xa8] sm:$0xff]  ;;  %v61_v46 = vld [vmem:[%s669_s1 + $0x158] sm:$0xff]  ;;  %v48_v47 = vld [vmem:[%s669_s1 + $0xf0] sm:$0xff] }
  0x11   :  { %210 = vmatpush.msrb.mxu1 %v64_v29  ;;  %253 = vmatpush.msra.mxu3 %v77_v30  ;;  %v34_v48 = vld [vmem:[%s669_s1 + $0x80] sm:$0xff]  ;;  %v35_v49 = vld [vmem:[%s669_s1 + $0x88] sm:$0xff]  ;;  %v57_v50 = vld [vmem:[%s669_s1 + $0x138] sm:$0xff] }
  0x12   :  { %167 = vmatpush.msra.mxu2 %v51_v32  ;;  %122 = vmatpush.msra.mxu0 %v46_v35  ;;  %v44_v51 = vld [vmem:[%s669_s1 + $0xd0] sm:$0xff]  ;;  %v30_v52 = vld [vmem:[%s669_s1 + $0x60] sm:$0xff]  ;;  %v31_v53 = vld [vmem:[%s669_s1 + $0x68] sm:$0xff] }
  0x13   :  { %211 = vmatpush.msrb.mxu1 %v60_v33  ;;  %254 = vmatpush.msra.mxu3 %v73_v34  ;;  %v53_v54 = vld [vmem:[%s669_s1 + $0x118] sm:$0xff]  ;;  %v40_v55 = vld [vmem:[%s669_s1 + $0xb0] sm:$0xff]  ;;  %v26_v56 = vld [vmem:[%s669_s1 + $0x40] sm:$0xff] }
  0x14   :  { %168 = vmatpush.msra.mxu2 %v47_v36  ;;  %123 = vmatpush.msra.mxu0 %v42_v39  ;;  %v27_v57 = vld [vmem:[%s669_s1 + $0x48] sm:$0xff]  ;;  %v49_v58 = vld [vmem:[%s669_s1 + $0xf8] sm:$0xff]  ;;  %v36_v59 = vld [vmem:[%s669_s1 + $0x90] sm:$0xff] }
  0x15   :  { %212 = vmatpush.msrb.mxu1 %v56_v37  ;;  %255 = vmatpush.msra.mxu3 %v69_v38  ;;  %v22_v60 = vld [vmem:[%s669_s1 + $0x20] sm:$0xff]  ;;  %v23_v61 = vld [vmem:[%s669_s1 + $0x28] sm:$0xff]  ;;  %v45_v62 = vld [vmem:[%s669_s1 + $0xd8] sm:$0xff] }
  0x16   :  { %169 = vmatpush.msra.mxu2 %v43_v40  ;;  %124 = vmatpush.msra.mxu0 %v38_v43  ;;  %v32_v63 = vld [vmem:[%s669_s1 + $0x70] sm:$0xff]  ;;  %v18_v0 = vld [vmem:[%s669_s1] sm:$0xff]  ;;  %v19_v1 = vld [vmem:[%s669_s1 + $0x8] sm:$0xff] }
  0x17   :  { %213 = vmatpush.msrb.mxu1 %v52_v41  ;;  %256 = vmatpush.msra.mxu3 %v65_v42  ;;  %v41_v2 = vld [vmem:[%s669_s1 + $0xb8] sm:$0xff]  ;;  %v14_v4 = vld [vmem:[%s670_s0] sm:$0xff]  ;;  %v28_v5 = vld [vmem:[%s669_s1 + $0x50] sm:$0xff] }
  0x18   :  { %339 = vmatmul.msk.f32.vlgmr.msra.gmra.mxu1 %vm94_vm1, %v530_v44  ;;  %170 = vmatpush.msra.mxu2 %v39_v45  ;;  %v37_v6 = vld [vmem:[%s669_s1 + $0x98] sm:$0xff]  ;;  %v24_v8 = vld [vmem:[%s669_s1 + $0x30] sm:$0xff]  ;;  %v306_v16 = vld [vmem:[%s671_s2] sm:$0xff] }
  0x19   :  { %257 = vmatpush.msra.mxu3 %v61_v46  ;;  %214 = vmatpush.msrb.mxu1 %v48_v47  ;;  %v33_v9 = vld [vmem:[%s669_s1 + $0x78] sm:$0xff]  ;;  %v20_v10 = vld [vmem:[%s669_s1 + $0x10] sm:$0xff] }
  0x1a   :  { %125 = vmatpush.msra.mxu0 %v34_v48  ;;  %171 = vmatpush.msra.mxu2 %v35_v49  ;;  %v93_v12 = vld [vmem:[%s669_s1 + $0x258] sm:$0x3f]  ;;  %v16_v14 = vld [vmem:[%s670_s0 + $0x10] sm:$0xff] }
  0x1b   :  { %258 = vmatpush.msra.mxu3 %v57_v50  ;;  %215 = vmatpush.msrb.mxu1 %v44_v51  ;;  %v29_v13 = vld [vmem:[%s669_s1 + $0x58] sm:$0xff] }
  0x1c   :  { %126 = vmatpush.msra.mxu0 %v30_v52  ;;  %172 = vmatpush.msra.mxu2 %v31_v53  ;;  %v89_v15 = vld [vmem:[%s669_s1 + $0x238] sm:$0xff] }
  0x1d   :  { %259 = vmatpush.msra.mxu3 %v53_v54  ;;  %216 = vmatpush.msrb.mxu1 %v40_v55  ;;  %v85_v17 = vld [vmem:[%s669_s1 + $0x218] sm:$0xff] }
  0x1e   :  { %345 = vmatmul.msk.f32.vlgmr.msrb.gmra.mxu3 %vm94_vm1, %v530_v44  ;;  %127 = vmatpush.msra.mxu0 %v26_v56 }
  0x1f   :  { %173 = vmatpush.msra.mxu2 %v27_v57  ;;  %260 = vmatpush.msra.mxu3 %v49_v58 }
  0x20   :  { %217 = vmatpush.msrb.mxu1 %v36_v59  ;;  %128 = vmatpush.msra.mxu0 %v22_v60 }
  0x21   :  { %340 = vmatmul.msk.f32.gmra.mxu1 %vm94_vm1, %v466_v24  ;;  %174 = vmatpush.msra.mxu2 %v23_v61 }
  0x22   :  { %261 = vmatpush.msra.mxu3 %v45_v62  ;;  %218 = vmatpush.msrb.mxu1 %v32_v63 }
  0x23   :  { %129 = vmatpush.msra.mxu0 %v18_v0  ;;  %175 = vmatpush.msra.mxu2 %v19_v1 }
  0x24   :  { %262 = vmatpush.msra.mxu3 %v41_v2  ;;  %130 = vmatmul.f32.vlgmr.msra.gmra.mxu0 %v14_v4 }
  0x25   :  { %176 = vmatmul.f32.vlgmr.msra.gmra.mxu2 %v14_v4  ;;  %219 = vmatpush.msrb.mxu1 %v28_v5 }
  0x26   :  { %263 = vmatpush.msra.mxu3 %v37_v6  ;;  %341 = vmatpush.msk.msrb.mxu2 %vm101_vm0, %v392_v3  ;;  %v25_v3 = vld [vmem:[%s669_s1 + $0x38] sm:$0xff] }
  0x27   :  { %220 = vmatpush.msrb.mxu1 %v24_v8  ;;  %346 = vmatmul.msk.f32.gmra.mxu3 %vm94_vm1, %v466_v24 }
  0x28   :  { %264 = vmatpush.msra.mxu3 %v33_v9  ;;  %197 = vmatpush.msrb.mxu2 %v408_v7  ;;  %v21_v7 = vld [vmem:[%s669_s1 + $0x18] sm:$0xff] }
  0x29   :  { %221 = vmatpush.msrb.mxu1 %v20_v10  ;;  %347 = vmatpush.msk.msrb.mxu0 %vm101_vm0, %v93_v12 }
  0x2a   :  { %222 = vmatmul.f32.vlgmr.msrb.gmra.mxu1 %v14_v4  ;;  %265 = vmatpush.msra.mxu3 %v29_v13 }
  0x2b   :  { %353 = vmatpush.msk.msra.mxu1 %vm101_vm0, %v93_v12  ;;  %198 = vmatpush.msrb.mxu2 %v422_v11  ;;  %v307_v11 = vld [vmem:[%s671_s2 + $0x8] sm:$0xff] }
  0x2c   :  { %266 = vmatpush.msra.mxu3 %v25_v3  ;;  %133 = vmatmul.f32.gmra.mxu0 %v16_v14 }
  0x2d   :  { %179 = vmatmul.f32.gmra.mxu2 %v16_v14  ;;  %289 = vmatpush.msrb.mxu0 %v89_v15 }
  0x2e   :  { %267 = vmatpush.msra.mxu3 %v21_v7  ;;  %357 = vset.pattern.permute.xlu0 %v358_v18 }
  0x2f   :  { %268 = vmatmul.f32.vlgmr.msra.gmra.mxu3 %v14_v4  ;;  %354 = vmatpush.msra.mxu1 %v89_v15 }
  0x30   :  { %310 = vperm.xlu0 %357, %v306_v16   ;;  %290 = vmatpush.msrb.mxu0 %v85_v17 }
  0x31   :  { %355 = vmatpush.msra.mxu1 %v85_v17 }
  0x32   :  { %225 = vmatmul.f32.gmra.mxu1 %v16_v14 }
  0x34   :  { %348 = vmatmul.msk.f32.vlgmr.msrb.gmra.mxu0 %vm94_vm1, %v530_v44 }
  0x35   :  { %342 = vmatmul.msk.f32.vlgmr.msrb.gmra.mxu2 %vm94_vm1, %v530_v44 }
  0x37   :  { %271 = vmatmul.f32.gmra.mxu3 %v16_v14 }
  0x38   :  { %315 = vperm.xlu0 %357, %v307_v11  }
  0x3a   :  { %349 = vmatmul.msk.f32.vlgmr.msra.gmra.mxu1 %vm94_vm1, %v466_v24 }
  0x91   :  { %v203_v20 = vpop.f32.mrf.mxu3 }
  0x95   :  { %v154_v19 = vpop.f32.mrf.mxu1 }
  0x9e   :  { %v157_v21 = vpop.f32.mrf.mxu1 }
  0xa1   :  { %v131_v22 = vpop.f32.mrf.mxu0  ;;  %v246_v23 = vpop.f32.mrf.mxu3 }
  0xa2   :  { %v311_v31 = vpop.permute.xlu0 %310  ;;  %v155_v35 = vadd.f32 %v154_v19, %v131_v22 }
  0xa4   :  { %v298_v40 = vmax.f32 %v155_v35, 0.0 }
  0xa6   :  { %v318_v53 = vmul.f32 %v311_v31, %v298_v40 }
  0xa7   :  { %v223_v25 = vpop.f32.mrf.mxu1 }
  0xa8   :  { %v177_v26 = vpop.f32.mrf.mxu2  ;;  %v247_v36 = vadd.f32 %v246_v23, %v223_v25 }
  0xa9   :  { %v134_v27 = vpop.f32.mrf.mxu0 }
  0xaa   :  { %v249_v28 = vpop.f32.mrf.mxu3  ;;  %v158_v38 = vadd.f32 %v157_v21, %v134_v27  ;;  %v300_v43 = vmax.f32 %v247_v36, 0.0  ;;  %v316_v48 = vpop.permute.xlu0 %315 }
  0xac   :  { %v302_v46 = vmax.f32 %v158_v38, 0.0  ;;  %v320_v54 = vmul.f32 %v311_v31, %v300_v43 }
  0xae   :  { %v322_v58 = vmul.f32 %v316_v48, %v302_v46 }
  0xaf   :  { %v226_v29 = vpop.f32.mrf.mxu1 }
  0xb0   :  { %v180_v30 = vpop.f32.mrf.mxu2  ;;  %v250_v24 = vadd.f32 %v249_v28, %v226_v29 }
  0xb1   :  { %v292_v32 = vpop.f32.mrf.mxu0  ;;  %v204_v37 = vadd.f32 %v203_v20, %v180_v30 }
  0xb2   :  { %v269_v33 = vpop.f32.mrf.mxu3  ;;  %v304_v49 = vmax.f32 %v250_v24, 0.0 }
  0xb3   :  { %v293_v34 = vadd.f32 %v292_v32, %v269_v33  ;;  %v303_v44 = vmax.f32 %v204_v37, 0.0 }
  0xb4   :  { %v324_v59 = vmul.f32 %v316_v48, %v304_v49 }
  0xb5   :  { %v301_v39 = vmax.f32 %v293_v34, 0.0  ;;  %v323_v55 = vmul.f32 %v316_v48, %v303_v44 }
  0xb7   :  { %v295_v42 = vpop.f32.mrf.mxu1  ;;  %v321_v50 = vmul.f32 %v311_v31, %v301_v39  ;;  %v327_v63 = vmax.f32 %v322_v58, %v323_v55 }
  0xb8   :  { %v200_v41 = vpop.f32.mrf.mxu2 }
  0xb9   :  { %v201_v45 = vadd.f32 %v200_v41, %v177_v26  ;;  %v328_v60 = vmax.f32 %v320_v54, %v321_v50 }
  0xba   :  { %v272_v47 = vpop.f32.mrf.mxu3 }
  0xbb   :  { %v299_v51 = vmax.f32 %v201_v45, 0.0  ;;  %v296_v52 = vadd.f32 %v295_v42, %v272_v47 }
  0xbd   :  { %v319_v56 = vmul.f32 %v311_v31, %v299_v51  ;;  %v305_v57 = vmax.f32 %v296_v52, 0.0 }
  0xbf   :  { %v326_v61 = vmax.f32 %v318_v53, %v319_v56  ;;  %v325_v62 = vmul.f32 %v316_v48, %v305_v57 }
  0xc1   :  { %v330_v0 = vmax.f32 %v326_v61, %v328_v60  ;;  %v329_v1 = vmax.f32 %v324_v59, %v325_v62 }
  0xc3   :  { %332 = vst [vmem:[%s672_s3] sm:$0xff] %v330_v0  ;;  %v331_v2 = vmax.f32 %v327_v63, %v329_v1 }
  0xc5   :  { %333 = vst [vmem:[%s672_s3 + $0x8] sm:$0xff] %v331_v2 }

// kernel: lenet_forward.5
= control target key start
LH: loop header
LB: loop body
LE: loop exit
PB: predicated region body
PF: predicated region fallthrough
CT: control target
= control target key end

     0   :  { %vm87_vm0 = vcmask 130048   ;;  %s600_s0 = inlined_call_operand.vmem [shape: f32[2,400], index: 0, kind: input, shape index: {}]   ;;  %s601_s1 = inlined_call_operand.vmem [shape: f32[400,120], index: 1, kind: input, shape index: {}]   ;;  %s602_s2 = inlined_call_operand.vmem [shape: f32[1,120], index: 2, kind: input, shape index: {}]   ;;  %s603_s3 = inlined_call_operand.vmem [shape: f32[120,84], index: 3, kind: input, shape index: {}]   ;;  %s604_s4 = inlined_call_operand.vmem [shape: f32[1,84], index: 4, kind: input, shape index: {}]   ;;  %s605_s5 = inlined_call_operand.vmem [shape: f32[84,10], index: 5, kind: input, shape index: {}]   ;;  %s606_s6 = inlined_call_operand.vmem [shape: f32[1,10], index: 6, kind: input, shape index: {}]   ;;  %s607_s7 = inlined_call_operand.hbm [shape: f32[2,10], index: 7, kind: output, shape index: {}]  }
   0x1   :  { %v75_v0 = vld [vmem:[%s601_s1 + $0x178] sm:$0xff]  ;;  %v74_v1 = vld [vmem:[%s601_s1 + $0x170] sm:$0xff]  ;;  %v73_v5 = vld [vmem:[%s601_s1 + $0x168] sm:$0xff] }
   0x2   :  { %v43_v2 = vld [vmem:[%s601_s1 + $0x78] sm:$0xff]  ;;  %130 = vmatpush.msra.mxu2 %v75_v0  ;;  %v42_v4 = vld [vmem:[%s601_s1 + $0x70] sm:$0xff]  ;;  %v41_v7 = vld [vmem:[%s601_s1 + $0x68] sm:$0xff] }
   0x3   :  { %90 = vmatpush.msra.mxu0 %v43_v2  ;;  %v59_v3 = vld [vmem:[%s601_s1 + $0xf8] sm:$0xff]  ;;  %v58_v6 = vld [vmem:[%s601_s1 + $0xf0] sm:$0xff]  ;;  %v57_v8 = vld [vmem:[%s601_s1 + $0xe8] sm:$0xff] }
   0x4   :  { %110 = vmatpush.msra.mxu1 %v59_v3  ;;  %131 = vmatpush.msra.mxu2 %v74_v1  ;;  %v72_v9 = vld [vmem:[%s601_s1 + $0x160] sm:$0xff]  ;;  %v71_v12 = vld [vmem:[%s601_s1 + $0x158] sm:$0xff]  ;;  %v70_v15 = vld [vmem:[%s601_s1 + $0x150] sm:$0xff] }
   0x5   :  { %91 = vmatpush.msra.mxu0 %v42_v4  ;;  %v40_v10 = vld [vmem:[%s601_s1 + $0x60] sm:$0xff]  ;;  %v39_v13 = vld [vmem:[%s601_s1 + $0x58] sm:$0xff]  ;;  %v38_v16 = vld [vmem:[%s601_s1 + $0x50] sm:$0xff] }
   0x6   :  { %111 = vmatpush.msra.mxu1 %v58_v6  ;;  %132 = vmatpush.msra.mxu2 %v73_v5  ;;  %v56_v11 = vld [vmem:[%s601_s1 + $0xe0] sm:$0xff]  ;;  %v55_v14 = vld [vmem:[%s601_s1 + $0xd8] sm:$0xff]  ;;  %v54_v17 = vld [vmem:[%s601_s1 + $0xd0] sm:$0xff] }
   0x7   :  { %92 = vmatpush.msra.mxu0 %v41_v7  ;;  %v69_v18 = vld [vmem:[%s601_s1 + $0x148] sm:$0xff]  ;;  %v68_v21 = vld [vmem:[%s601_s1 + $0x140] sm:$0xff]  ;;  %v67_v24 = vld [vmem:[%s601_s1 + $0x138] sm:$0xff] }
   0x8   :  { %112 = vmatpush.msra.mxu1 %v57_v8  ;;  %133 = vmatpush.msra.mxu2 %v72_v9  ;;  %v37_v19 = vld [vmem:[%s601_s1 + $0x48] sm:$0xff]  ;;  %v36_v22 = vld [vmem:[%s601_s1 + $0x40] sm:$0xff]  ;;  %v35_v25 = vld [vmem:[%s601_s1 + $0x38] sm:$0xff] }
   0x9   :  { %93 = vmatpush.msra.mxu0 %v40_v10  ;;  %v53_v20 = vld [vmem:[%s601_s1 + $0xc8] sm:$0xff]  ;;  %v52_v23 = vld [vmem:[%s601_s1 + $0xc0] sm:$0xff]  ;;  %v51_v27 = vld [vmem:[%s601_s1 + $0xb8] sm:$0xff] }
   0xa   :  { %113 = vmatpush.msra.mxu1 %v56_v11  ;;  %134 = vmatpush.msra.mxu2 %v71_v12  ;;  %v77_v26 = vld [vmem:[%s601_s1 + $0x188] sm:$0xff]  ;;  %v27_v28 = vld [vmem:[%s600_s0] sm:$0xff]  ;;  %v66_v29 = vld [vmem:[%s601_s1 + $0x130] sm:$0xff] }
   0xb   :  { %94 = vmatpush.msra.mxu0 %v39_v13  ;;  %v34_v30 = vld [vmem:[%s601_s1 + $0x30] sm:$0xff]  ;;  %164 = vmatpush.msra.mxu3 %v77_v26  ;;  %79 = vst [vmem:[#allocation1] ss:$4 sm:$0xff] %v27_v28  ;;  %v76_v31 = vld [vmem:[%s601_s1 + $0x180] sm:$0xff]  ;;  %v65_v34 = vld [vmem:[%s601_s1 + $0x128] sm:$0xff] }
   0xc   :  { %114 = vmatpush.msra.mxu1 %v55_v14  ;;  %135 = vmatpush.msra.mxu2 %v70_v15  ;;  %v50_v32 = vld [vmem:[%s601_s1 + $0xb0] sm:$0xff]  ;;  %v64_v35 = vld [vmem:[%s601_s1 + $0x120] sm:$0xff]  ;;  %v33_v36 = vld [vmem:[%s601_s1 + $0x28] sm:$0xff] }
   0xd   :  { %95 = vmatpush.msra.mxu0 %v38_v16  ;;  %v190_v33 = vld [vmem:[%s603_s3 + $0x70] sm:$0xff]  ;;  %165 = vmatpush.msra.mxu3 %v76_v31  ;;  %v49_v37 = vld [vmem:[%s601_s1 + $0xa8] sm:$0xff]  ;;  %v32_v38 = vld [vmem:[%s601_s1 + $0x20] sm:$0xff] }
   0xe   :  { %115 = vmatpush.msra.mxu1 %v54_v17  ;;  %136 = vmatpush.msra.mxu2 %v69_v18  ;;  %v189_v39 = vld [vmem:[%s603_s3 + $0x68] sm:$0xff]  ;;  %v48_v40 = vld [vmem:[%s601_s1 + $0xa0] sm:$0xff] }
   0xf   :  { %96 = vmatpush.msra.mxu0 %v37_v19  ;;  %196 = vmatpush.msrb.mxu3 %v190_v33 }
  0x10   :  { %116 = vmatpush.msra.mxu1 %v53_v20  ;;  %137 = vmatpush.msra.mxu2 %v68_v21 }
  0x11   :  { %97 = vmatpush.msra.mxu0 %v36_v22 }
  0x12   :  { %117 = vmatpush.msra.mxu1 %v52_v23  ;;  %138 = vmatpush.msra.mxu2 %v67_v24 }
  0x13   :  { %98 = vmatpush.msra.mxu0 %v35_v25 }
  0x14   :  { %118 = vmatpush.msra.mxu1 %v51_v27  ;;  %139 = vmatpush.msra.mxu2 %v66_v29 }
  0x15   :  { %99 = vmatpush.msra.mxu0 %v34_v30 }
  0x16   :  { %119 = vmatpush.msra.mxu1 %v50_v32  ;;  %140 = vmatpush.msra.mxu2 %v65_v34 }
  0x17   :  { %100 = vmatpush.msra.mxu0 %v33_v36 }
  0x18   :  { %12 = vsyncpa [#allocation3], 0  ;;  %120 = vmatpush.msra.mxu1 %v49_v37  ;;  %v63_v41 = vld [vmem:[%s601_s1 + $0x118] sm:$0xff]  ;;  %197 = vmatpush.msrb.mxu3 %v189_v39  ;;  %v188_v45 = vld [vmem:[%s603_s3 + $0x60] sm:$0xff]  ;;  %vm240_vm1 = vcmask 1043456   ;;  %vm191_vm2 = vcmask 982016  }
  0x19   :  { %v31_v42 = vld [vmem:[%s601_s1 + $0x18] sm:$0xff]  ;;  %141 = vmatpush.msra.mxu2 %v64_v35  ;;  %101 = vmatpush.msra.mxu0 %v32_v38  ;;  %v62_v46 = vld [vmem:[%s601_s1 + $0x110] sm:$0xff]  ;;  %v61_v50 = vld [vmem:[%s601_s1 + $0x108] sm:$0xff]  ;;  %vm236_vm3 = vcmask 687104   ;;  %s316_s15 = smov [#allocation2]   ;;  %vm264_vm4 = vcmask 74752  }
  0x1a   :  { %v47_v43 = vld [vmem:[%s601_s1 + $0x98] sm:$0xff]  ;;  %121 = vmatpush.msra.mxu1 %v48_v40  ;;  %v30_v47 = vld [vmem:[%s601_s1 + $0x10] sm:$0xff]  ;;  %v29_v51 = vld [vmem:[%s601_s1 + $0x8] sm:$0xff]  ;;  %198 = vmatpush.msrb.mxu3 %v188_v45  ;;  %s271_s16 = sshll.u32 %s316_s15, 4  ;;  %s272_s16 = int_to_ptr.vmem [resolvable:$true] %s271_s16 }
  0x1b   :  { %v83_v44 = vld.sshfl [vmem:[#allocation1 + $0x18] sm:$0xff pattern:$0x73625140]  ;;  %142 = vmatpush.msra.mxu2 %v63_v41  ;;  %102 = vmatpush.msra.mxu0 %v31_v42  ;;  %v46_v48 = vld [vmem:[%s601_s1 + $0x90] sm:$0xff]  ;;  %v45_v52 = vld [vmem:[%s601_s1 + $0x88] sm:$0xff] }
  0x1c   :  { %282 = vmatmul.msk.f32.vlgmr.msra.gmra.mxu3 %vm87_vm0, %v83_v44  ;;  %v187_v49 = vld [vmem:[%s603_s3 + $0x58] sm:$0xff]  ;;  %122 = vmatpush.msra.mxu1 %v47_v43  ;;  %v186_v53 = vld [vmem:[%s603_s3 + $0x50] sm:$0xff]  ;;  %v60_v54 = vld [vmem:[%s601_s1 + $0x100] sm:$0xff] }
  0x1d   :  { %143 = vmatpush.msra.mxu2 %v62_v46  ;;  %103 = vmatpush.msra.mxu0 %v30_v47  ;;  %v28_v55 = vld [vmem:[%s601_s1] sm:$0xff]  ;;  %v82_v56 = vld.sshfl [vmem:[#allocation1 + $0x10] sm:$0xff pattern:$0x73625140]  ;;  %v185_v60 = vld [vmem:[%s603_s3 + $0x48] sm:$0xff] }
  0x1e   :  { %123 = vmatpush.msra.mxu1 %v46_v48  ;;  %199 = vmatpush.msrb.mxu3 %v187_v49  ;;  %v44_v57 = vld [vmem:[%s601_s1 + $0x80] sm:$0xff]  ;;  %v81_v59 = vld.sshfl [vmem:[#allocation1 + $0x8] sm:$0xff pattern:$0x73625140]  ;;  %v183_v62 = vld [vmem:[%s603_s3 + $0x38] sm:$0xff] }
  0x1f   :  { %144 = vmatpush.msra.mxu2 %v61_v50  ;;  %104 = vmatpush.msra.mxu0 %v29_v51  ;;  %v80_v58 = vld.sshfl [vmem:[#allocation1] sm:$0xff pattern:$0x73625140]  ;;  %v182_v63 = vld [vmem:[%s603_s3 + $0x30] sm:$0xff]  ;;  %v181_v0 = vld [vmem:[%s603_s3 + $0x28] sm:$0xff] }
  0x20   :  { %124 = vmatpush.msra.mxu1 %v45_v52  ;;  %200 = vmatpush.msrb.mxu3 %v186_v53  ;;  %v184_v61 = vld [vmem:[%s603_s3 + $0x40] sm:$0xff]  ;;  %v179_v2 = vld [vmem:[%s603_s3 + $0x18] sm:$0xff]  ;;  %v178_v3 = vld [vmem:[%s603_s3 + $0x10] sm:$0xff] }
  0x21   :  { %145 = vmatpush.msra.mxu2 %v60_v54  ;;  %105 = vmatpush.msra.mxu0 %v28_v55  ;;  %v180_v1 = vld [vmem:[%s603_s3 + $0x20] sm:$0xff]  ;;  %v177_v4 = vld [vmem:[%s603_s3 + $0x8] sm:$0xff]  ;;  %v231_v6 = vld [vmem:[%s605_s5 + $0x50] sm:$0xf] }
  0x22   :  { %146 = vmatmul.f32.vlgmr.msra.gmra.mxu2 %v82_v56  ;;  %125 = vmatpush.msra.mxu1 %v44_v57  ;;  %v176_v5 = vld [vmem:[%s603_s3] sm:$0xff]  ;;  %v230_v7 = vld [vmem:[%s605_s5 + $0x48] sm:$0xff]  ;;  %v228_v9 = vld [vmem:[%s605_s5 + $0x38] sm:$0xff] }
  0x23   :  { %106 = vmatmul.f32.vlgmr.msra.gmra.mxu0 %v80_v58  ;;  %126 = vmatmul.f32.vlgmr.msra.gmra.mxu1 %v81_v59  ;;  %v229_v8 = vld [vmem:[%s605_s5 + $0x40] sm:$0xff]  ;;  %v227_v10 = vld [vmem:[%s605_s5 + $0x30] sm:$0xff]  ;;  %v226_v11 = vld [vmem:[%s605_s5 + $0x28] sm:$0xff] }
  0x24   :  { %201 = vmatpush.msrb.mxu3 %v185_v60  ;;  %284 = vmatpush.msk.msrb.mxu0 %vm240_vm1, %v231_v6  ;;  %v225_v12 = vld [vmem:[%s605_s5 + $0x20] sm:$0xff]  ;;  %v224_v13 = vld [vmem:[%s605_s5 + $0x18] sm:$0xff]  ;;  %v223_v24 = vld [vmem:[%s605_s5 + $0x10] sm:$0xff] }
  0x25   :  { %v287_v21 = vld [vmem:[%s602_s2] ss:$0 sm:$0xff]  ;;  %v222_v25 = vld [vmem:[%s605_s5 + $0x8] sm:$0xff] }
  0x26   :  { %202 = vmatpush.msrb.mxu3 %v184_v61  ;;  %250 = vmatpush.msrb.mxu0 %v230_v7  ;;  %v221_v26 = vld [vmem:[%s605_s5] sm:$0xff]  ;;  %s273_s5 = sshll.u32 %s607_s7, 4  ;;  %s274_s5 = int_to_ptr.hbm [resolvable:$true] %s273_s5 }
  0x27   :  { %v288_v27 = vld [vmem:[%s604_s4] ss:$0 sm:$0xff] }
  0x28   :  { %203 = vmatpush.msrb.mxu3 %v183_v62  ;;  %251 = vmatpush.msrb.mxu0 %v229_v8  ;;  %v289_v31 = vld [vmem:[%s606_s6] ss:$0 sm:$0xff] }
  0x2a   :  { %204 = vmatpush.msrb.mxu3 %v182_v63  ;;  %252 = vmatpush.msrb.mxu0 %v228_v9 }
  0x2c   :  { %205 = vmatpush.msrb.mxu3 %v181_v0  ;;  %253 = vmatpush.msrb.mxu0 %v227_v10 }
  0x2e   :  { %206 = vmatpush.msrb.mxu3 %v180_v1  ;;  %254 = vmatpush.msrb.mxu0 %v226_v11 }
  0x30   :  { %207 = vmatpush.msrb.mxu3 %v179_v2  ;;  %255 = vmatpush.msrb.mxu0 %v225_v12 }
  0x32   :  { %208 = vmatpush.msrb.mxu3 %v178_v3  ;;  %256 = vmatpush.msrb.mxu0 %v224_v13 }
  0x34   :  { %209 = vmatpush.msrb.mxu3 %v177_v4  ;;  %257 = vmatpush.msrb.mxu0 %v223_v24 }
  0x36   :  { %210 = vmatpush.msrb.mxu3 %v176_v5  ;;  %258 = vmatpush.msrb.mxu0 %v222_v25 }
  0x38   :  { %259 = vmatpush.msrb.mxu0 %v221_v26 }
  0x9f   :  { %v167_v18 = vpop.f32.mrf.mxu3 }
  0xa0   :  { %v107_v14 = vpop.f32.mrf.mxu0  ;;  %v127_v15 = vpop.f32.mrf.mxu1 }
  0xa1   :  { %v128_v16 = vadd.f32 %v127_v15, %v107_v14 }
  0xa5   :  { %v147_v17 = vpop.f32.mrf.mxu2 }
  0xa6   :  { %v148_v19 = vadd.f32 %v147_v17, %v128_v16 }
  0xa8   :  { %v168_v20 = vadd.f32 %v167_v18, %v148_v19 }
  0xaa   :  { %v170_v22 = vmax.f32 %v168_v20, 0.0 }
  0xac   :  { %v175_v23 = vmul.f32 %v287_v21, %v170_v22 }
  0xae   :  { %283 = vmatmul.msk.f32.vlgmr.msrb.gmra.mxu3 %vm191_vm2, %v175_v23 }
 0x131   :  { %v212_v28 = vpop.f32.mrf.mxu3 }
 0x132   :  { %v215_v29 = vmax.f32 %v212_v28, 0.0 }
 0x134   :  { %v220_v30 = vmul.f32 %v288_v27, %v215_v29 }
 0x136   :  { %285 = vmatmul.msk.f32.vlgmr.msrb.gmra.mxu0 %vm236_vm3, %v220_v30 }
 0x1b3   :  { %v261_v32 = vpop.f32.mrf.mxu0 }
 0x1b4   :  { %v262_v33 = vadd.f32 %v289_v31, %v261_v32 }
 0x1b6   :  { %265 = vst.msk [vmem:[#allocation2] sm:$0x3] %vm264_vm4, %v262_v33 }
 0x1b7   :  { %276 = dma.vmem_to_hbm [thread:$0]  %s272_s16, 32, %s274_s5, [#allocation3]  }
 0x1b8   :  { %314 = dma.done.wait [#allocation3], 32  }
 0x1b9   :  { %315 = vsyncadd [#allocation3], 4294967264 }
 0x1ba   :  { %281 = vsyncpa [#allocation3], 1 }

</bundles_post_ra>
